<compile_context>
chip_gen: v5e
topology: v5e:2x2
jax: 0.10.0
libtpu: 0.0.40
codegen_flags: <defaults>
</compile_context>

<pallas_src>
import functools

import jax
import jax.numpy as jnp
import numpy as np
from jax.experimental import pallas as pl
from jax.experimental.pallas import tpu as pltpu

BN_EPS = 1e-5
LANE = 128


def _round_up(x, m):
    return (x + m - 1) // m * m


def _pick_row_tile(n, l, target_rows=2048):
    """Largest divisor of n whose tile holds ~target_rows (N*L) rows."""
    tn = max(1, min(n, max(1, target_rows // max(l, 1))))
    while n % tn:
        tn -= 1
    return tn


# ----------------------------- in-kernel helpers -----------------------------
def _conv_taps(h, w_ref, b_ref, acc_ref, k, use_bf16):
    """'same' 1-D conv of h (TN, L, Cp) with w_ref (K, Cp, Cp), bias b_ref (1, Cp)."""
    tn, l, cp = h.shape
    pad = k // 2
    # Fold the conv bias into the accumulator init (saves a full-tile add later).
    acc_ref[...] = jnp.broadcast_to(b_ref[...].reshape(1, 1, cp), (tn, l, cp))
    h2d = h.reshape(tn * l, cp)
    if use_bf16:
        h2d = h2d.astype(jnp.bfloat16)
    for t in range(k):                      # static unroll, k <= 5
        wt = w_ref[t]
        if use_bf16:
            wt = wt.astype(jnp.bfloat16)
        p = jnp.dot(h2d, wt, preferred_element_type=jnp.float32).reshape(tn, l, cp)
        d = t - pad
        if d == 0:
            acc_ref[...] += p
        elif d > 0:       # out rows [0, L-d) take in rows [d, L); rest hits zero pad
            acc_ref[:, : l - d, :] += p[:, d:, :]
        else:             # out rows [-d, L) take in rows [0, L+d)
            acc_ref[:, -d:, :] += p[:, : l + d, :]
    return acc_ref[...]


def _emit_stats(y, stats_ref):
    """Accumulate per-channel sum / sum-of-squares (f32) across grid iterations."""
    tn, l, cp = y.shape

    @pl.when(pl.program_id(0) == 0)
    def _():
        stats_ref[...] = jnp.zeros_like(stats_ref)

    y2d = y.reshape(tn * l, cp)
    stats_ref[0:1, :] += jnp.sum(y2d, axis=0, keepdims=True)
    stats_ref[1:2, :] += jnp.sum(y2d * y2d, axis=0, keepdims=True)


def _bn_relu(y, stats_ref, g, be, inv_count):
    """Training-mode BatchNorm (biased variance) + ReLU from accumulated stats."""
    mean = stats_ref[0:1, :] * inv_count
    var = jnp.maximum(stats_ref[1:2, :] * inv_count - mean * mean, 0.0)
    scale = jax.lax.rsqrt(var + BN_EPS) * g            # (1, Cp)
    shift = be - mean * scale                           # (1, Cp)
    cp = y.shape[-1]
    return jnp.maximum(y * scale.reshape(1, 1, cp) + shift.reshape(1, 1, cp), 0.0)


# --------------------------------- kernels ------------------------------------
def _conv_stats_kernel(k, use_bf16, x_ref, w_ref, b_ref, y_ref, stats_ref, acc_ref):
    y = _conv_taps(x_ref[...], w_ref, b_ref, acc_ref, k, use_bf16)
    y_ref[...] = y
    _emit_stats(y, stats_ref)


def _bn_relu_conv_stats_kernel(k, inv_count, use_bf16,
                               y_ref, stats_in_ref, g_ref, be_ref, w_ref, b_ref,
                               z_ref, stats_out_ref, acc_ref):
    h = _bn_relu(y_ref[...], stats_in_ref, g_ref[...], be_ref[...], inv_count)
    z = _conv_taps(h, w_ref, b_ref, acc_ref, k, use_bf16)
    z_ref[...] = z
    _emit_stats(z, stats_out_ref)


def _bn_relu_kernel(inv_count, y_ref, stats_ref, g_ref, be_ref, o_ref):
    o_ref[...] = _bn_relu(y_ref[...], stats_ref, g_ref[...], be_ref[...], inv_count)


# --------------------------------- wrapper -------------------------------------
def residual_block_pallas(x_ncl, params, kernel_sizes, *, row_tile=None,
                          use_bf16_matmul=False):
    """x_ncl: (N, C_in, L) float32 (PyTorch layout). Returns (N, C_out, L)."""
    n, c_in, l = x_ncl.shape
    c_out = params["w1"].shape[0]
    ks = tuple(int(k) for k in kernel_sizes)
    for k in ks:
        assert k % 2 == 1, "only odd kernel sizes keep L_out == L with pad = k//2"
        assert k // 2 < l, "kernel half-width must be smaller than L"

    cp = _round_up(max(c_in, c_out, 1), LANE)           # lane-dense channel axis
    tn = row_tile if row_tile is not None else _pick_row_tile(n, l)
    assert n % tn == 0
    grid = (n // tn,)
    inv_count = 1.0 / float(n * l)

    # (N, C, L) -> (N, L, Cp): channels on the 128-lane axis, zero-padded.
    x = jnp.transpose(x_ncl, (0, 2, 1)).astype(jnp.float32)
    x = jnp.pad(x, ((0, 0), (0, 0), (0, cp - c_in)))

    def prep_w(w):  # PyTorch (Cout, Cin, K) -> (K, Cp, Cp); w[t] maps Cin->Cout
        w = jnp.transpose(w.astype(jnp.float32), (2, 1, 0))
        return jnp.pad(w, ((0, 0), (0, cp - w.shape[1]), (0, cp - w.shape[2])))

    def prep_v(v):  # (C,) -> (1, Cp)
        return jnp.pad(v.astype(jnp.float32).reshape(1, -1), ((0, 0), (0, cp - v.shape[0])))

    w1, b1 = prep_w(params["w1"]), prep_v(params["b1"])
    w2, b2 = prep_w(params["w2"]), prep_v(params["b2"])
    w3, b3 = prep_w(params["w3"]), prep_v(params["b3"])
    g1, be1 = prep_v(params["g1"]), prep_v(params["be1"])
    g2, be2 = prep_v(params["g2"]), prep_v(params["be2"])
    g3, be3 = prep_v(params["g3"]), prep_v(params["be3"])

    tile_spec = pl.BlockSpec((tn, l, cp), lambda i: (i, 0, 0))
    stats_spec = pl.BlockSpec((2, cp), lambda i: (0, 0))          # resident accumulator
    row_spec = pl.BlockSpec((1, cp), lambda i: (0, 0))

    def wspec(k):
        return pl.BlockSpec((k, cp, cp), lambda i: (0, 0, 0))

    acc_scratch = pltpu.VMEM((tn, l, cp), jnp.float32)
    y_shape = jax.ShapeDtypeStruct((n, l, cp), jnp.float32)
    stats_shape = jax.ShapeDtypeStruct((2, cp), jnp.float32)

    arb = pltpu.CompilerParams(dimension_semantics=("arbitrary",))   # stats reduction
    par = pltpu.CompilerParams(dimension_semantics=("parallel",))

    def conv_cost(k):
        return pl.CostEstimate(
            flops=2 * n * l * k * cp * cp + 4 * n * l * cp,
            transcendentals=0,
            bytes_accessed=4 * (2 * n * l * cp + k * cp * cp + 8 * cp))

    # Stage 1: conv1 (+bias) and bn1 batch statistics.
    y1, s1 = pl.pallas_call(
        functools.partial(_conv_stats_kernel, ks[0], use_bf16_matmul),
        grid=grid,
        in_specs=[tile_spec, wspec(ks[0]), row_spec],
        out_specs=(tile_spec, stats_spec),
        out_shape=(y_shape, stats_shape),
        scratch_shapes=[acc_scratch],
        compiler_params=arb,
        cost_estimate=conv_cost(ks[0]),
    )(x, w1, b1)

    # Stage 2: bn1 + relu fused with conv2 (+bias) and bn2 statistics.
    y2, s2 = pl.pallas_call(
        functools.partial(_bn_relu_conv_stats_kernel, ks[1], inv_count, use_bf16_matmul),
        grid=grid,
        in_specs=[tile_spec, stats_spec, row_spec, row_spec, wspec(ks[1]), row_spec],
        out_specs=(tile_spec, stats_spec),
        out_shape=(y_shape, stats_shape),
        scratch_shapes=[acc_scratch],
        compiler_params=arb,
        cost_estimate=conv_cost(ks[1]),
    )(y1, s1, g1, be1, w2, b2)

    # Stage 3: bn2 + relu fused with conv3 (+bias) and bn3 statistics.
    y3, s3 = pl.pallas_call(
        functools.partial(_bn_relu_conv_stats_kernel, ks[2], inv_count, use_bf16_matmul),
        grid=grid,
        in_specs=[tile_spec, stats_spec, row_spec, row_spec, wspec(ks[2]), row_spec],
        out_specs=(tile_spec, stats_spec),
        out_shape=(y_shape, stats_shape),
        scratch_shapes=[acc_scratch],
        compiler_params=arb,
        cost_estimate=conv_cost(ks[2]),
    )(y2, s2, g2, be2, w3, b3)

    # Final bn3 + relu.
    out = pl.pallas_call(
        functools.partial(_bn_relu_kernel, inv_count),
        grid=grid,
        in_specs=[tile_spec, stats_spec, row_spec, row_spec],
        out_specs=tile_spec,
        out_shape=y_shape,
        compiler_params=par,
    )(y3, s3, g3, be3)

    # (N, L, Cp) -> PyTorch layout (N, C_out, L); drop channel padding.
    return jnp.transpose(out[:, :, :c_out], (0, 2, 1))


# ------------------------------ pure-JAX reference -----------------------------
def residual_block_ref(x_ncl, params, kernel_sizes):
    def stage(x, w, b, g, be):
        k = w.shape[2]
        y = jax.lax.conv_general_dilated(
            x, w, window_strides=(1,), padding=[(k // 2, k // 2)],
            dimension_numbers=("NCH", "OIH", "NCH"))
        y = y + b[None, :, None]
        mean = y.mean(axis=(0, 2), keepdims=True)
        var = ((y - mean) ** 2).mean(axis=(0, 2), keepdims=True)
        y = (y - mean) / jnp.sqrt(var + BN_EPS) * g[None, :, None] + be[None, :, None]
        return jnp.maximum(y, 0.0)

    h = stage(x_ncl, params["w1"], params["b1"], params["g1"], params["be1"])
    h = stage(h, params["w2"], params["b2"], params["g2"], params["be2"])
    h = stage(h, params["w3"], params["b3"], params["g3"], params["be3"])
    return h


# -------------------------------------------------------------------------------
if __name__ == "__main__":
    N, C_IN, C_OUT, L = 2, 4, 8, 16
    KERNEL_SIZES = (3, 5, 3)

    key = jax.random.PRNGKey(0)
    keys = jax.random.split(key, 16)

    def init_conv(kw, kb, c_out, c_in, k):
        scale = 1.0 / np.sqrt(c_in * k)
        w = jax.random.uniform(kw, (c_out, c_in, k), jnp.float32, -scale, scale)
        b = jax.random.uniform(kb, (c_out,), jnp.float32, -scale, scale)
        return w, b

    w1, b1 = init_conv(keys[0], keys[1], C_OUT, C_IN, KERNEL_SIZES[0])
    w2, b2 = init_conv(keys[2], keys[3], C_OUT, C_OUT, KERNEL_SIZES[1])
    w3, b3 = init_conv(keys[4], keys[5], C_OUT, C_OUT, KERNEL_SIZES[2])

    params = {
        "w1": w1, "b1": b1,
        "g1": 1.0 + 0.1 * jax.random.normal(keys[6], (C_OUT,), jnp.float32),
        "be1": 0.1 * jax.random.normal(keys[7], (C_OUT,), jnp.float32),
        "w2": w2, "b2": b2,
        "g2": 1.0 + 0.1 * jax.random.normal(keys[8], (C_OUT,), jnp.float32),
        "be2": 0.1 * jax.random.normal(keys[9], (C_OUT,), jnp.float32),
        "w3": w3, "b3": b3,
        "g3": 1.0 + 0.1 * jax.random.normal(keys[10], (C_OUT,), jnp.float32),
        "be3": 0.1 * jax.random.normal(keys[11], (C_OUT,), jnp.float32),
    }

    x = jax.random.normal(keys[12], (N, C_IN, L), jnp.float32)

    # row_tile=1 forces a multi-step grid so the cross-tile BN-stats
    # accumulation and the pipelined tiling path are exercised in the demo.
    block_fn = jax.jit(functools.partial(
        residual_block_pallas, kernel_sizes=KERNEL_SIZES, row_tile=1))
    out = block_fn(x, params)
    out = jax.block_until_ready(out)

    ref = residual_block_ref(x, params, KERNEL_SIZES)
    np.testing.assert_allclose(np.asarray(out), np.asarray(ref), rtol=1e-4, atol=1e-4)

    print("KERNEL_OK")
</pallas_src>

<mosaic_0001>
module attributes {stable_mosaic.version = 11 : i64} {
  func.func @_conv_stats_kernel(%arg0: i32, %arg1: memref<1x16x128xf32, #tpu.memory_space<vmem>>, %arg2: memref<3x128x128xf32, #tpu.memory_space<vmem>>, %arg3: memref<1x128xf32, #tpu.memory_space<vmem>>, %arg4: memref<1x16x128xf32, #tpu.memory_space<vmem>>, %arg5: memref<2x128xf32, #tpu.memory_space<vmem>>, %arg6: memref<1x16x128xf32, #tpu.memory_space<vmem>>) attributes {dimension_semantics = [#tpu.dimension_semantics<arbitrary>], iteration_bounds = array<i64: 2>, scalar_prefetch = 0 : i64, scratch_operands = 1 : i64, tpu.core_type = #tpu.core_type<tc>, window_params = [{transform_indices = @transform_0, window_bounds = array<i64: 1, 16, 128>}, {pipeline_mode = #tpu.pipeline_mode<synchronous>, transform_indices = @transform_1, window_bounds = array<i64: 3, 128, 128>}, {pipeline_mode = #tpu.pipeline_mode<synchronous>, transform_indices = @transform_2, window_bounds = array<i64: 1, 128>}, {transform_indices = @transform_3, window_bounds = array<i64: 1, 16, 128>}, {pipeline_mode = #tpu.pipeline_mode<synchronous>, transform_indices = @transform_4, window_bounds = array<i64: 2, 128>}]} {
    %c0 = arith.constant 0 : index
    %c0_0 = arith.constant 0 : index
    %c0_1 = arith.constant 0 : index
    %0 = vector.load %arg1[%c0, %c0_0, %c0_1] : memref<1x16x128xf32, #tpu.memory_space<vmem>>, vector<1x16x128xf32>
    %c0_2 = arith.constant 0 : index
    %c0_3 = arith.constant 0 : index
    %1 = vector.load %arg3[%c0_2, %c0_3] : memref<1x128xf32, #tpu.memory_space<vmem>>, vector<1x128xf32>
    %2 = vector.shape_cast %1 : vector<1x128xf32> to vector<1x1x128xf32>
    %3 = vector.shape_cast %2 : vector<1x1x128xf32> to vector<1x1x128xf32>
    %4 = vector.broadcast %3 : vector<1x1x128xf32> to vector<1x16x128xf32>
    %c0_4 = arith.constant 0 : index
    %c0_5 = arith.constant 0 : index
    %c0_6 = arith.constant 0 : index
    %5 = vector.load %arg6[%c0_4, %c0_5, %c0_6] : memref<1x16x128xf32, #tpu.memory_space<vmem>>, vector<1x16x128xf32>
    tpu.vector_store %arg6[%c0_4, %c0_5, %c0_6], %4 {strides = array<i32>} : memref<1x16x128xf32, #tpu.memory_space<vmem>>, vector<1x16x128xf32>,
    %6 = vector.shape_cast %0 : vector<1x16x128xf32> to vector<16x128xf32>
    %c0_7 = arith.constant 0 : index
    %c0_8 = arith.constant 0 : index
    %c0_9 = arith.constant 0 : index
    %7 = vector.load %arg2[%c0_7, %c0_8, %c0_9] : memref<3x128x128xf32, #tpu.memory_space<vmem>>, vector<1x128x128xf32>
    %8 = vector.shape_cast %7 : vector<1x128x128xf32> to vector<128x128xf32>
    %cst = arith.constant dense<0.000000e+00> : vector<16x128xf32>
    %9 = tpu.matmul %6, %8, %cst {dimension_numbers = #tpu.dot_dimension_numbers<[1], [0], [0], [1], [0, 0, 1, 1], [], []>} : vector<16x128xf32>, vector<128x128xf32>, vector<16x128xf32> -> vector<16x128xf32>
    %10 = vector.shape_cast %9 : vector<16x128xf32> to vector<1x16x128xf32>
    %c0_10 = arith.constant 0 : index
    %c1 = arith.constant 1 : index
    %c0_11 = arith.constant 0 : index
    %11 = vector.load %arg6[%c0_10, %c1, %c0_11] : memref<1x16x128xf32, #tpu.memory_space<vmem>>, vector<1x15x128xf32>
    %12 = vector.extract_strided_slice %10 {offsets = [0, 0, 0], sizes = [1, 15, 128], strides = [1, 1, 1]} : vector<1x16x128xf32> to vector<1x15x128xf32>
    %13 = arith.addf %11, %12 : vector<1x15x128xf32>
    %c0_12 = arith.constant 0 : index
    %c1_13 = arith.constant 1 : index
    %c0_14 = arith.constant 0 : index
    %14 = vector.load %arg6[%c0_12, %c1_13, %c0_14] : memref<1x16x128xf32, #tpu.memory_space<vmem>>, vector<1x15x128xf32>
    tpu.vector_store %arg6[%c0_12, %c1_13, %c0_14], %13 {strides = array<i32>} : memref<1x16x128xf32, #tpu.memory_space<vmem>>, vector<1x15x128xf32>,
    %c1_15 = arith.constant 1 : index
    %c0_16 = arith.constant 0 : index
    %c0_17 = arith.constant 0 : index
    %15 = vector.load %arg2[%c1_15, %c0_16, %c0_17] : memref<3x128x128xf32, #tpu.memory_space<vmem>>, vector<1x128x128xf32>
    %16 = vector.shape_cast %15 : vector<1x128x128xf32> to vector<128x128xf32>
    %cst_18 = arith.constant dense<0.000000e+00> : vector<16x128xf32>
    %17 = tpu.matmul %6, %16, %cst_18 {dimension_numbers = #tpu.dot_dimension_numbers<[1], [0], [0], [1], [0, 0, 1, 1], [], []>} : vector<16x128xf32>, vector<128x128xf32>, vector<16x128xf32> -> vector<16x128xf32>
    %18 = vector.shape_cast %17 : vector<16x128xf32> to vector<1x16x128xf32>
    %c0_19 = arith.constant 0 : index
    %c0_20 = arith.constant 0 : index
    %c0_21 = arith.constant 0 : index
    %19 = vector.load %arg6[%c0_19, %c0_20, %c0_21] : memref<1x16x128xf32, #tpu.memory_space<vmem>>, vector<1x16x128xf32>
    %20 = arith.addf %19, %18 : vector<1x16x128xf32>
    %c0_22 = arith.constant 0 : index
    %c0_23 = arith.constant 0 : index
    %c0_24 = arith.constant 0 : index
    %21 = vector.load %arg6[%c0_22, %c0_23, %c0_24] : memref<1x16x128xf32, #tpu.memory_space<vmem>>, vector<1x16x128xf32>
    tpu.vector_store %arg6[%c0_22, %c0_23, %c0_24], %20 {strides = array<i32>} : memref<1x16x128xf32, #tpu.memory_space<vmem>>, vector<1x16x128xf32>,
    %c2 = arith.constant 2 : index
    %c0_25 = arith.constant 0 : index
    %c0_26 = arith.constant 0 : index
    %22 = vector.load %arg2[%c2, %c0_25, %c0_26] : memref<3x128x128xf32, #tpu.memory_space<vmem>>, vector<1x128x128xf32>
    %23 = vector.shape_cast %22 : vector<1x128x128xf32> to vector<128x128xf32>
    %cst_27 = arith.constant dense<0.000000e+00> : vector<16x128xf32>
    %24 = tpu.matmul %6, %23, %cst_27 {dimension_numbers = #tpu.dot_dimension_numbers<[1], [0], [0], [1], [0, 0, 1, 1], [], []>} : vector<16x128xf32>, vector<128x128xf32>, vector<16x128xf32> -> vector<16x128xf32>
    %25 = vector.shape_cast %24 : vector<16x128xf32> to vector<1x16x128xf32>
    %c0_28 = arith.constant 0 : index
    %c0_29 = arith.constant 0 : index
    %c0_30 = arith.constant 0 : index
    %26 = vector.load %arg6[%c0_28, %c0_29, %c0_30] : memref<1x16x128xf32, #tpu.memory_space<vmem>>, vector<1x15x128xf32>
    %27 = vector.extract_strided_slice %25 {offsets = [0, 1, 0], sizes = [1, 15, 128], strides = [1, 1, 1]} : vector<1x16x128xf32> to vector<1x15x128xf32>
    %28 = arith.addf %26, %27 : vector<1x15x128xf32>
    %c0_31 = arith.constant 0 : index
    %c0_32 = arith.constant 0 : index
    %c0_33 = arith.constant 0 : index
    %29 = vector.load %arg6[%c0_31, %c0_32, %c0_33] : memref<1x16x128xf32, #tpu.memory_space<vmem>>, vector<1x15x128xf32>
    tpu.vector_store %arg6[%c0_31, %c0_32, %c0_33], %28 {strides = array<i32>} : memref<1x16x128xf32, #tpu.memory_space<vmem>>, vector<1x15x128xf32>,
    %c0_34 = arith.constant 0 : index
    %c0_35 = arith.constant 0 : index
    %c0_36 = arith.constant 0 : index
    %30 = vector.load %arg6[%c0_34, %c0_35, %c0_36] : memref<1x16x128xf32, #tpu.memory_space<vmem>>, vector<1x16x128xf32>
    %c0_37 = arith.constant 0 : index
    %c0_38 = arith.constant 0 : index
    %c0_39 = arith.constant 0 : index
    %31 = vector.load %arg4[%c0_37, %c0_38, %c0_39] : memref<1x16x128xf32, #tpu.memory_space<vmem>>, vector<1x16x128xf32>
    tpu.vector_store %arg4[%c0_37, %c0_38, %c0_39], %30 {strides = array<i32>} : memref<1x16x128xf32, #tpu.memory_space<vmem>>, vector<1x16x128xf32>,
    %c0_i32 = arith.constant 0 : i32
    %32 = arith.cmpi eq, %arg0, %c0_i32 : i32
    %33 = arith.extui %32 : i1 to i32
    %c0_i32_40 = arith.constant 0 : i32
    %34 = arith.cmpi ne, %33, %c0_i32_40 : i32
    scf.if %34 {
      %cst_51 = arith.constant 0.000000e+00 : f32
      %47 = vector.broadcast %cst_51 : f32 to vector<2x128xf32>
      %c0_52 = arith.constant 0 : index
      %c0_53 = arith.constant 0 : index
      %48 = vector.load %arg5[%c0_52, %c0_53] : memref<2x128xf32, #tpu.memory_space<vmem>>, vector<2x128xf32>
      tpu.vector_store %arg5[%c0_52, %c0_53], %47 {strides = array<i32>} : memref<2x128xf32, #tpu.memory_space<vmem>>, vector<2x128xf32>,
    } else {
    }
    %35 = vector.shape_cast %30 : vector<1x16x128xf32> to vector<16x128xf32>
    %c0_41 = arith.constant 0 : index
    %c0_42 = arith.constant 0 : index
    %36 = vector.load %arg5[%c0_41, %c0_42] : memref<2x128xf32, #tpu.memory_space<vmem>>, vector<1x128xf32>
    %cst_43 = arith.constant dense<0.000000e+00> : vector<128xf32>
    %37 = vector.multi_reduction <add>, %35, %cst_43 [0] : vector<16x128xf32> to vector<128xf32>
    %38 = vector.shape_cast %37 : vector<128xf32> to vector<1x128xf32>
    %39 = arith.addf %36, %38 : vector<1x128xf32>
    %c0_44 = arith.constant 0 : index
    %c0_45 = arith.constant 0 : index
    %40 = vector.load %arg5[%c0_44, %c0_45] : memref<2x128xf32, #tpu.memory_space<vmem>>, vector<1x128xf32>
    tpu.vector_store %arg5[%c0_44, %c0_45], %39 {strides = array<i32>} : memref<2x128xf32, #tpu.memory_space<vmem>>, vector<1x128xf32>,
    %c1_46 = arith.constant 1 : index
    %c0_47 = arith.constant 0 : index
    %41 = vector.load %arg5[%c1_46, %c0_47] : memref<2x128xf32, #tpu.memory_space<vmem>>, vector<1x128xf32>
    %42 = arith.mulf %35, %35 : vector<16x128xf32>
    %cst_48 = arith.constant dense<0.000000e+00> : vector<128xf32>
    %43 = vector.multi_reduction <add>, %42, %cst_48 [0] : vector<16x128xf32> to vector<128xf32>
    %44 = vector.shape_cast %43 : vector<128xf32> to vector<1x128xf32>
    %45 = arith.addf %41, %44 : vector<1x128xf32>
    %c1_49 = arith.constant 1 : index
    %c0_50 = arith.constant 0 : index
    %46 = vector.load %arg5[%c1_49, %c0_50] : memref<2x128xf32, #tpu.memory_space<vmem>>, vector<1x128xf32>
    tpu.vector_store %arg5[%c1_49, %c0_50], %45 {strides = array<i32>} : memref<2x128xf32, #tpu.memory_space<vmem>>, vector<1x128xf32>,
    return
  }
  func.func @transform_0(%arg0: i32) -> (i32, i32, i32) {
    %c0_i32 = arith.constant 0 : i32
    %c0_i32_0 = arith.constant 0 : i32
    %c0_i32_1 = arith.constant 0 : i32
    return %arg0, %c0_i32, %c0_i32_0 : i32, i32, i32
  }
  func.func @transform_1(%arg0: i32) -> (i32, i32, i32) {
    %c0_i32 = arith.constant 0 : i32
    %c0_i32_0 = arith.constant 0 : i32
    %c0_i32_1 = arith.constant 0 : i32
    %c0_i32_2 = arith.constant 0 : i32
    return %c0_i32, %c0_i32_0, %c0_i32_1 : i32, i32, i32
  }
  func.func @transform_2(%arg0: i32) -> (i32, i32) {
    %c0_i32 = arith.constant 0 : i32
    %c0_i32_0 = arith.constant 0 : i32
    %c0_i32_1 = arith.constant 0 : i32
    return %c0_i32, %c0_i32_0 : i32, i32
  }
  func.func @transform_3(%arg0: i32) -> (i32, i32, i32) {
    %c0_i32 = arith.constant 0 : i32
    %c0_i32_0 = arith.constant 0 : i32
    %c0_i32_1 = arith.constant 0 : i32
    return %arg0, %c0_i32, %c0_i32_0 : i32, i32, i32
  }
  func.func @transform_4(%arg0: i32) -> (i32, i32) {
    %c0_i32 = arith.constant 0 : i32
    %c0_i32_0 = arith.constant 0 : i32
    %c0_i32_1 = arith.constant 0 : i32
    return %c0_i32, %c0_i32_0 : i32, i32
  }
}

module attributes {stable_mosaic.version = 11 : i64} {
  func.func @_bn_relu_conv_stats_kernel(%arg0: i32, %arg1: memref<1x16x128xf32, #tpu.memory_space<vmem>>, %arg2: memref<2x128xf32, #tpu.memory_space<vmem>>, %arg3: memref<1x128xf32, #tpu.memory_space<vmem>>, %arg4: memref<1x128xf32, #tpu.memory_space<vmem>>, %arg5: memref<5x128x128xf32, #tpu.memory_space<vmem>>, %arg6: memref<1x128xf32, #tpu.memory_space<vmem>>, %arg7: memref<1x16x128xf32, #tpu.memory_space<vmem>>, %arg8: memref<2x128xf32, #tpu.memory_space<vmem>>, %arg9: memref<1x16x128xf32, #tpu.memory_space<vmem>>) attributes {dimension_semantics = [#tpu.dimension_semantics<arbitrary>], iteration_bounds = array<i64: 2>, scalar_prefetch = 0 : i64, scratch_operands = 1 : i64, tpu.core_type = #tpu.core_type<tc>, window_params = [{transform_indices = @transform_0, window_bounds = array<i64: 1, 16, 128>}, {pipeline_mode = #tpu.pipeline_mode<synchronous>, transform_indices = @transform_1, window_bounds = array<i64: 2, 128>}, {pipeline_mode = #tpu.pipeline_mode<synchronous>, transform_indices = @transform_2, window_bounds = array<i64: 1, 128>}, {pipeline_mode = #tpu.pipeline_mode<synchronous>, transform_indices = @transform_3, window_bounds = array<i64: 1, 128>}, {pipeline_mode = #tpu.pipeline_mode<synchronous>, transform_indices = @transform_4, window_bounds = array<i64: 5, 128, 128>}, {pipeline_mode = #tpu.pipeline_mode<synchronous>, transform_indices = @transform_5, window_bounds = array<i64: 1, 128>}, {transform_indices = @transform_6, window_bounds = array<i64: 1, 16, 128>}, {pipeline_mode = #tpu.pipeline_mode<synchronous>, transform_indices = @transform_7, window_bounds = array<i64: 2, 128>}]} {
    %c0 = arith.constant 0 : index
    %c0_0 = arith.constant 0 : index
    %c0_1 = arith.constant 0 : index
    %0 = vector.load %arg1[%c0, %c0_0, %c0_1] : memref<1x16x128xf32, #tpu.memory_space<vmem>>, vector<1x16x128xf32>
    %c0_2 = arith.constant 0 : index
    %c0_3 = arith.constant 0 : index
    %1 = vector.load %arg3[%c0_2, %c0_3] : memref<1x128xf32, #tpu.memory_space<vmem>>, vector<1x128xf32>
    %c0_4 = arith.constant 0 : index
    %c0_5 = arith.constant 0 : index
    %2 = vector.load %arg4[%c0_4, %c0_5] : memref<1x128xf32, #tpu.memory_space<vmem>>, vector<1x128xf32>
    %c0_6 = arith.constant 0 : index
    %c0_7 = arith.constant 0 : index
    %3 = vector.load %arg2[%c0_6, %c0_7] : memref<2x128xf32, #tpu.memory_space<vmem>>, vector<1x128xf32>
    %cst = arith.constant 3.125000e-02 : f32
    %4 = vector.broadcast %cst : f32 to vector<1x128xf32>
    %5 = arith.mulf %3, %4 : vector<1x128xf32>
    %c1 = arith.constant 1 : index
    %c0_8 = arith.constant 0 : index
    %6 = vector.load %arg2[%c1, %c0_8] : memref<2x128xf32, #tpu.memory_space<vmem>>, vector<1x128xf32>
    %cst_9 = arith.constant 3.125000e-02 : f32
    %7 = vector.broadcast %cst_9 : f32 to vector<1x128xf32>
    %8 = arith.mulf %6, %7 : vector<1x128xf32>
    %9 = arith.mulf %5, %5 : vector<1x128xf32>
    %10 = arith.subf %8, %9 : vector<1x128xf32>
    %cst_10 = arith.constant 0.000000e+00 : f32
    %11 = vector.broadcast %cst_10 : f32 to vector<1x128xf32>
    %12 = arith.maximumf %10, %11 : vector<1x128xf32>
    %cst_11 = arith.constant 9.99999974E-6 : f32
    %13 = vector.broadcast %cst_11 : f32 to vector<1x128xf32>
    %14 = arith.addf %12, %13 : vector<1x128xf32>
    %15 = math.rsqrt %14 : vector<1x128xf32>
    %16 = arith.mulf %15, %1 : vector<1x128xf32>
    %17 = arith.mulf %5, %16 : vector<1x128xf32>
    %18 = arith.subf %2, %17 : vector<1x128xf32>
    %19 = vector.shape_cast %16 : vector<1x128xf32> to vector<1x1x128xf32>
    %20 = vector.broadcast %19 : vector<1x1x128xf32> to vector<1x16x128xf32>
    %21 = arith.mulf %0, %20 : vector<1x16x128xf32>
    %22 = vector.shape_cast %18 : vector<1x128xf32> to vector<1x1x128xf32>
    %23 = vector.broadcast %22 : vector<1x1x128xf32> to vector<1x16x128xf32>
    %24 = arith.addf %21, %23 : vector<1x16x128xf32>
    %cst_12 = arith.constant 0.000000e+00 : f32
    %25 = vector.broadcast %cst_12 : f32 to vector<1x16x128xf32>
    %26 = arith.maximumf %24, %25 : vector<1x16x128xf32>
    %c0_13 = arith.constant 0 : index
    %c0_14 = arith.constant 0 : index
    %27 = vector.load %arg6[%c0_13, %c0_14] : memref<1x128xf32, #tpu.memory_space<vmem>>, vector<1x128xf32>
    %28 = vector.shape_cast %27 : vector<1x128xf32> to vector<1x1x128xf32>
    %29 = vector.shape_cast %28 : vector<1x1x128xf32> to vector<1x1x128xf32>
    %30 = vector.broadcast %29 : vector<1x1x128xf32> to vector<1x16x128xf32>
    %c0_15 = arith.constant 0 : index
    %c0_16 = arith.constant 0 : index
    %c0_17 = arith.constant 0 : index
    %31 = vector.load %arg9[%c0_15, %c0_16, %c0_17] : memref<1x16x128xf32, #tpu.memory_space<vmem>>, vector<1x16x128xf32>
    tpu.vector_store %arg9[%c0_15, %c0_16, %c0_17], %30 {strides = array<i32>} : memref<1x16x128xf32, #tpu.memory_space<vmem>>, vector<1x16x128xf32>,
    %32 = vector.shape_cast %26 : vector<1x16x128xf32> to vector<16x128xf32>
    %c0_18 = arith.constant 0 : index
    %c0_19 = arith.constant 0 : index
    %c0_20 = arith.constant 0 : index
    %33 = vector.load %arg5[%c0_18, %c0_19, %c0_20] : memref<5x128x128xf32, #tpu.memory_space<vmem>>, vector<1x128x128xf32>
    %34 = vector.shape_cast %33 : vector<1x128x128xf32> to vector<128x128xf32>
    %cst_21 = arith.constant dense<0.000000e+00> : vector<16x128xf32>
    %35 = tpu.matmul %32, %34, %cst_21 {dimension_numbers = #tpu.dot_dimension_numbers<[1], [0], [0], [1], [0, 0, 1, 1], [], []>} : vector<16x128xf32>, vector<128x128xf32>, vector<16x128xf32> -> vector<16x128xf32>
    %36 = vector.shape_cast %35 : vector<16x128xf32> to vector<1x16x128xf32>
    %c0_22 = arith.constant 0 : index
    %c2 = arith.constant 2 : index
    %c0_23 = arith.constant 0 : index
    %37 = vector.load %arg9[%c0_22, %c2, %c0_23] : memref<1x16x128xf32, #tpu.memory_space<vmem>>, vector<1x14x128xf32>
    %38 = vector.extract_strided_slice %36 {offsets = [0, 0, 0], sizes = [1, 14, 128], strides = [1, 1, 1]} : vector<1x16x128xf32> to vector<1x14x128xf32>
    %39 = arith.addf %37, %38 : vector<1x14x128xf32>
    %c0_24 = arith.constant 0 : index
    %c2_25 = arith.constant 2 : index
    %c0_26 = arith.constant 0 : index
    %40 = vector.load %arg9[%c0_24, %c2_25, %c0_26] : memref<1x16x128xf32, #tpu.memory_space<vmem>>, vector<1x14x128xf32>
    tpu.vector_store %arg9[%c0_24, %c2_25, %c0_26], %39 {strides = array<i32>} : memref<1x16x128xf32, #tpu.memory_space<vmem>>, vector<1x14x128xf32>,
    %c1_27 = arith.constant 1 : index
    %c0_28 = arith.constant 0 : index
    %c0_29 = arith.constant 0 : index
    %41 = vector.load %arg5[%c1_27, %c0_28, %c0_29] : memref<5x128x128xf32, #tpu.memory_space<vmem>>, vector<1x128x128xf32>
    %42 = vector.shape_cast %41 : vector<1x128x128xf32> to vector<128x128xf32>
    %cst_30 = arith.constant dense<0.000000e+00> : vector<16x128xf32>
    %43 = tpu.matmul %32, %42, %cst_30 {dimension_numbers = #tpu.dot_dimension_numbers<[1], [0], [0], [1], [0, 0, 1, 1], [], []>} : vector<16x128xf32>, vector<128x128xf32>, vector<16x128xf32> -> vector<16x128xf32>
    %44 = vector.shape_cast %43 : vector<16x128xf32> to vector<1x16x128xf32>
    %c0_31 = arith.constant 0 : index
    %c1_32 = arith.constant 1 : index
    %c0_33 = arith.constant 0 : index
    %45 = vector.load %arg9[%c0_31, %c1_32, %c0_33] : memref<1x16x128xf32, #tpu.memory_space<vmem>>, vector<1x15x128xf32>
    %46 = vector.extract_strided_slice %44 {offsets = [0, 0, 0], sizes = [1, 15, 128], strides = [1, 1, 1]} : vector<1x16x128xf32> to vector<1x15x128xf32>
    %47 = arith.addf %45, %46 : vector<1x15x128xf32>
    %c0_34 = arith.constant 0 : index
    %c1_35 = arith.constant 1 : index
    %c0_36 = arith.constant 0 : index
    %48 = vector.load %arg9[%c0_34, %c1_35, %c0_36] : memref<1x16x128xf32, #tpu.memory_space<vmem>>, vector<1x15x128xf32>
    tpu.vector_store %arg9[%c0_34, %c1_35, %c0_36], %47 {strides = array<i32>} : memref<1x16x128xf32, #tpu.memory_space<vmem>>, vector<1x15x128xf32>,
    %c2_37 = arith.constant 2 : index
    %c0_38 = arith.constant 0 : index
    %c0_39 = arith.constant 0 : index
    %49 = vector.load %arg5[%c2_37, %c0_38, %c0_39] : memref<5x128x128xf32, #tpu.memory_space<vmem>>, vector<1x128x128xf32>
    %50 = vector.shape_cast %49 : vector<1x128x128xf32> to vector<128x128xf32>
    %cst_40 = arith.constant dense<0.000000e+00> : vector<16x128xf32>
    %51 = tpu.matmul %32, %50, %cst_40 {dimension_numbers = #tpu.dot_dimension_numbers<[1], [0], [0], [1], [0, 0, 1, 1], [], []>} : vector<16x128xf32>, vector<128x128xf32>, vector<16x128xf32> -> vector<16x128xf32>
    %52 = vector.shape_cast %51 : vector<16x128xf32> to vector<1x16x128xf32>
    %c0_41 = arith.constant 0 : index
    %c0_42 = arith.constant 0 : index
    %c0_43 = arith.constant 0 : index
    %53 = vector.load %arg9[%c0_41, %c0_42, %c0_43] : memref<1x16x128xf32, #tpu.memory_space<vmem>>, vector<1x16x128xf32>
    %54 = arith.addf %53, %52 : vector<1x16x128xf32>
    %c0_44 = arith.constant 0 : index
    %c0_45 = arith.constant 0 : index
    %c0_46 = arith.constant 0 : index
    %55 = vector.load %arg9[%c0_44, %c0_45, %c0_46] : memref<1x16x128xf32, #tpu.memory_space<vmem>>, vector<1x16x128xf32>
    tpu.vector_store %arg9[%c0_44, %c0_45, %c0_46], %54 {strides = array<i32>} : memref<1x16x128xf32, #tpu.memory_space<vmem>>, vector<1x16x128xf32>,
    %c3 = arith.constant 3 : index
    %c0_47 = arith.constant 0 : index
    %c0_48 = arith.constant 0 : index
    %56 = vector.load %arg5[%c3, %c0_47, %c0_48] : memref<5x128x128xf32, #tpu.memory_space<vmem>>, vector<1x128x128xf32>
    %57 = vector.shape_cast %56 : vector<1x128x128xf32> to vector<128x128xf32>
    %cst_49 = arith.constant dense<0.000000e+00> : vector<16x128xf32>
    %58 = tpu.matmul %32, %57, %cst_49 {dimension_numbers = #tpu.dot_dimension_numbers<[1], [0], [0], [1], [0, 0, 1, 1], [], []>} : vector<16x128xf32>, vector<128x128xf32>, vector<16x128xf32> -> vector<16x128xf32>
    %59 = vector.shape_cast %58 : vector<16x128xf32> to vector<1x16x128xf32>
    %c0_50 = arith.constant 0 : index
    %c0_51 = arith.constant 0 : index
    %c0_52 = arith.constant 0 : index
    %60 = vector.load %arg9[%c0_50, %c0_51, %c0_52] : memref<1x16x128xf32, #tpu.memory_space<vmem>>, vector<1x15x128xf32>
    %61 = vector.extract_strided_slice %59 {offsets = [0, 1, 0], sizes = [1, 15, 128], strides = [1, 1, 1]} : vector<1x16x128xf32> to vector<1x15x128xf32>
    %62 = arith.addf %60, %61 : vector<1x15x128xf32>
    %c0_53 = arith.constant 0 : index
    %c0_54 = arith.constant 0 : index
    %c0_55 = arith.constant 0 : index
    %63 = vector.load %arg9[%c0_53, %c0_54, %c0_55] : memref<1x16x128xf32, #tpu.memory_space<vmem>>, vector<1x15x128xf32>
    tpu.vector_store %arg9[%c0_53, %c0_54, %c0_55], %62 {strides = array<i32>} : memref<1x16x128xf32, #tpu.memory_space<vmem>>, vector<1x15x128xf32>,
    %c4 = arith.constant 4 : index
    %c0_56 = arith.constant 0 : index
    %c0_57 = arith.constant 0 : index
    %64 = vector.load %arg5[%c4, %c0_56, %c0_57] : memref<5x128x128xf32, #tpu.memory_space<vmem>>, vector<1x128x128xf32>
    %65 = vector.shape_cast %64 : vector<1x128x128xf32> to vector<128x128xf32>
    %cst_58 = arith.constant dense<0.000000e+00> : vector<16x128xf32>
    %66 = tpu.matmul %32, %65, %cst_58 {dimension_numbers = #tpu.dot_dimension_numbers<[1], [0], [0], [1], [0, 0, 1, 1], [], []>} : vector<16x128xf32>, vector<128x128xf32>, vector<16x128xf32> -> vector<16x128xf32>
    %67 = vector.shape_cast %66 : vector<16x128xf32> to vector<1x16x128xf32>
    %c0_59 = arith.constant 0 : index
    %c0_60 = arith.constant 0 : index
    %c0_61 = arith.constant 0 : index
    %68 = vector.load %arg9[%c0_59, %c0_60, %c0_61] : memref<1x16x128xf32, #tpu.memory_space<vmem>>, vector<1x14x128xf32>
    %69 = vector.extract_strided_slice %67 {offsets = [0, 2, 0], sizes = [1, 14, 128], strides = [1, 1, 1]} : vector<1x16x128xf32> to vector<1x14x128xf32>
    %70 = arith.addf %68, %69 : vector<1x14x128xf32>
    %c0_62 = arith.constant 0 : index
    %c0_63 = arith.constant 0 : index
    %c0_64 = arith.constant 0 : index
    %71 = vector.load %arg9[%c0_62, %c0_63, %c0_64] : memref<1x16x128xf32, #tpu.memory_space<vmem>>, vector<1x14x128xf32>
    tpu.vector_store %arg9[%c0_62, %c0_63, %c0_64], %70 {strides = array<i32>} : memref<1x16x128xf32, #tpu.memory_space<vmem>>, vector<1x14x128xf32>,
    %c0_65 = arith.constant 0 : index
    %c0_66 = arith.constant 0 : index
    %c0_67 = arith.constant 0 : index
    %72 = vector.load %arg9[%c0_65, %c0_66, %c0_67] : memref<1x16x128xf32, #tpu.memory_space<vmem>>, vector<1x16x128xf32>
    %c0_68 = arith.constant 0 : index
    %c0_69 = arith.constant 0 : index
    %c0_70 = arith.constant 0 : index
    %73 = vector.load %arg7[%c0_68, %c0_69, %c0_70] : memref<1x16x128xf32, #tpu.memory_space<vmem>>, vector<1x16x128xf32>
    tpu.vector_store %arg7[%c0_68, %c0_69, %c0_70], %72 {strides = array<i32>} : memref<1x16x128xf32, #tpu.memory_space<vmem>>, vector<1x16x128xf32>,
    %c0_i32 = arith.constant 0 : i32
    %74 = arith.cmpi eq, %arg0, %c0_i32 : i32
    %75 = arith.extui %74 : i1 to i32
    %c0_i32_71 = arith.constant 0 : i32
    %76 = arith.cmpi ne, %75, %c0_i32_71 : i32
    scf.if %76 {
      %cst_82 = arith.constant 0.000000e+00 : f32
      %89 = vector.broadcast %cst_82 : f32 to vector<2x128xf32>
      %c0_83 = arith.constant 0 : index
      %c0_84 = arith.constant 0 : index
      %90 = vector.load %arg8[%c0_83, %c0_84] : memref<2x128xf32, #tpu.memory_space<vmem>>, vector<2x128xf32>
      tpu.vector_store %arg8[%c0_83, %c0_84], %89 {strides = array<i32>} : memref<2x128xf32, #tpu.memory_space<vmem>>, vector<2x128xf32>,
    } else {
    }
    %77 = vector.shape_cast %72 : vector<1x16x128xf32> to vector<16x128xf32>
    %c0_72 = arith.constant 0 : index
    %c0_73 = arith.constant 0 : index
    %78 = vector.load %arg8[%c0_72, %c0_73] : memref<2x128xf32, #tpu.memory_space<vmem>>, vector<1x128xf32>
    %cst_74 = arith.constant dense<0.000000e+00> : vector<128xf32>
    %79 = vector.multi_reduction <add>, %77, %cst_74 [0] : vector<16x128xf32> to vector<128xf32>
    %80 = vector.shape_cast %79 : vector<128xf32> to vector<1x128xf32>
    %81 = arith.addf %78, %80 : vector<1x128xf32>
    %c0_75 = arith.constant 0 : index
    %c0_76 = arith.constant 0 : index
    %82 = vector.load %arg8[%c0_75, %c0_76] : memref<2x128xf32, #tpu.memory_space<vmem>>, vector<1x128xf32>
    tpu.vector_store %arg8[%c0_75, %c0_76], %81 {strides = array<i32>} : memref<2x128xf32, #tpu.memory_space<vmem>>, vector<1x128xf32>,
    %c1_77 = arith.constant 1 : index
    %c0_78 = arith.constant 0 : index
    %83 = vector.load %arg8[%c1_77, %c0_78] : memref<2x128xf32, #tpu.memory_space<vmem>>, vector<1x128xf32>
    %84 = arith.mulf %77, %77 : vector<16x128xf32>
    %cst_79 = arith.constant dense<0.000000e+00> : vector<128xf32>
    %85 = vector.multi_reduction <add>, %84, %cst_79 [0] : vector<16x128xf32> to vector<128xf32>
    %86 = vector.shape_cast %85 : vector<128xf32> to vector<1x128xf32>
    %87 = arith.addf %83, %86 : vector<1x128xf32>
    %c1_80 = arith.constant 1 : index
    %c0_81 = arith.constant 0 : index
    %88 = vector.load %arg8[%c1_80, %c0_81] : memref<2x128xf32, #tpu.memory_space<vmem>>, vector<1x128xf32>
    tpu.vector_store %arg8[%c1_80, %c0_81], %87 {strides = array<i32>} : memref<2x128xf32, #tpu.memory_space<vmem>>, vector<1x128xf32>,
    return
  }
  func.func @transform_0(%arg0: i32) -> (i32, i32, i32) {
    %c0_i32 = arith.constant 0 : i32
    %c0_i32_0 = arith.constant 0 : i32
    %c0_i32_1 = arith.constant 0 : i32
    return %arg0, %c0_i32, %c0_i32_0 : i32, i32, i32
  }
  func.func @transform_1(%arg0: i32) -> (i32, i32) {
    %c0_i32 = arith.constant 0 : i32
    %c0_i32_0 = arith.constant 0 : i32
    %c0_i32_1 = arith.constant 0 : i32
    return %c0_i32, %c0_i32_0 : i32, i32
  }
  func.func @transform_2(%arg0: i32) -> (i32, i32) {
    %c0_i32 = arith.constant 0 : i32
    %c0_i32_0 = arith.constant 0 : i32
    %c0_i32_1 = arith.constant 0 : i32
    return %c0_i32, %c0_i32_0 : i32, i32
  }
  func.func @transform_3(%arg0: i32) -> (i32, i32) {
    %c0_i32 = arith.constant 0 : i32
    %c0_i32_0 = arith.constant 0 : i32
    %c0_i32_1 = arith.constant 0 : i32
    return %c0_i32, %c0_i32_0 : i32, i32
  }
  func.func @transform_4(%arg0: i32) -> (i32, i32, i32) {
    %c0_i32 = arith.constant 0 : i32
    %c0_i32_0 = arith.constant 0 : i32
    %c0_i32_1 = arith.constant 0 : i32
    %c0_i32_2 = arith.constant 0 : i32
    return %c0_i32, %c0_i32_0, %c0_i32_1 : i32, i32, i32
  }
  func.func @transform_5(%arg0: i32) -> (i32, i32) {
    %c0_i32 = arith.constant 0 : i32
    %c0_i32_0 = arith.constant 0 : i32
    %c0_i32_1 = arith.constant 0 : i32
    return %c0_i32, %c0_i32_0 : i32, i32
  }
  func.func @transform_6(%arg0: i32) -> (i32, i32, i32) {
    %c0_i32 = arith.constant 0 : i32
    %c0_i32_0 = arith.constant 0 : i32
    %c0_i32_1 = arith.constant 0 : i32
    return %arg0, %c0_i32, %c0_i32_0 : i32, i32, i32
  }
  func.func @transform_7(%arg0: i32) -> (i32, i32) {
    %c0_i32 = arith.constant 0 : i32
    %c0_i32_0 = arith.constant 0 : i32
    %c0_i32_1 = arith.constant 0 : i32
    return %c0_i32, %c0_i32_0 : i32, i32
  }
}

module attributes {stable_mosaic.version = 11 : i64} {
  func.func @_bn_relu_conv_stats_kernel(%arg0: i32, %arg1: memref<1x16x128xf32, #tpu.memory_space<vmem>>, %arg2: memref<2x128xf32, #tpu.memory_space<vmem>>, %arg3: memref<1x128xf32, #tpu.memory_space<vmem>>, %arg4: memref<1x128xf32, #tpu.memory_space<vmem>>, %arg5: memref<3x128x128xf32, #tpu.memory_space<vmem>>, %arg6: memref<1x128xf32, #tpu.memory_space<vmem>>, %arg7: memref<1x16x128xf32, #tpu.memory_space<vmem>>, %arg8: memref<2x128xf32, #tpu.memory_space<vmem>>, %arg9: memref<1x16x128xf32, #tpu.memory_space<vmem>>) attributes {dimension_semantics = [#tpu.dimension_semantics<arbitrary>], iteration_bounds = array<i64: 2>, scalar_prefetch = 0 : i64, scratch_operands = 1 : i64, tpu.core_type = #tpu.core_type<tc>, window_params = [{transform_indices = @transform_0, window_bounds = array<i64: 1, 16, 128>}, {pipeline_mode = #tpu.pipeline_mode<synchronous>, transform_indices = @transform_1, window_bounds = array<i64: 2, 128>}, {pipeline_mode = #tpu.pipeline_mode<synchronous>, transform_indices = @transform_2, window_bounds = array<i64: 1, 128>}, {pipeline_mode = #tpu.pipeline_mode<synchronous>, transform_indices = @transform_3, window_bounds = array<i64: 1, 128>}, {pipeline_mode = #tpu.pipeline_mode<synchronous>, transform_indices = @transform_4, window_bounds = array<i64: 3, 128, 128>}, {pipeline_mode = #tpu.pipeline_mode<synchronous>, transform_indices = @transform_5, window_bounds = array<i64: 1, 128>}, {transform_indices = @transform_6, window_bounds = array<i64: 1, 16, 128>}, {pipeline_mode = #tpu.pipeline_mode<synchronous>, transform_indices = @transform_7, window_bounds = array<i64: 2, 128>}]} {
    %c0 = arith.constant 0 : index
    %c0_0 = arith.constant 0 : index
    %c0_1 = arith.constant 0 : index
    %0 = vector.load %arg1[%c0, %c0_0, %c0_1] : memref<1x16x128xf32, #tpu.memory_space<vmem>>, vector<1x16x128xf32>
    %c0_2 = arith.constant 0 : index
    %c0_3 = arith.constant 0 : index
    %1 = vector.load %arg3[%c0_2, %c0_3] : memref<1x128xf32, #tpu.memory_space<vmem>>, vector<1x128xf32>
    %c0_4 = arith.constant 0 : index
    %c0_5 = arith.constant 0 : index
    %2 = vector.load %arg4[%c0_4, %c0_5] : memref<1x128xf32, #tpu.memory_space<vmem>>, vector<1x128xf32>
    %c0_6 = arith.constant 0 : index
    %c0_7 = arith.constant 0 : index
    %3 = vector.load %arg2[%c0_6, %c0_7] : memref<2x128xf32, #tpu.memory_space<vmem>>, vector<1x128xf32>
    %cst = arith.constant 3.125000e-02 : f32
    %4 = vector.broadcast %cst : f32 to vector<1x128xf32>
    %5 = arith.mulf %3, %4 : vector<1x128xf32>
    %c1 = arith.constant 1 : index
    %c0_8 = arith.constant 0 : index
    %6 = vector.load %arg2[%c1, %c0_8] : memref<2x128xf32, #tpu.memory_space<vmem>>, vector<1x128xf32>
    %cst_9 = arith.constant 3.125000e-02 : f32
    %7 = vector.broadcast %cst_9 : f32 to vector<1x128xf32>
    %8 = arith.mulf %6, %7 : vector<1x128xf32>
    %9 = arith.mulf %5, %5 : vector<1x128xf32>
    %10 = arith.subf %8, %9 : vector<1x128xf32>
    %cst_10 = arith.constant 0.000000e+00 : f32
    %11 = vector.broadcast %cst_10 : f32 to vector<1x128xf32>
    %12 = arith.maximumf %10, %11 : vector<1x128xf32>
    %cst_11 = arith.constant 9.99999974E-6 : f32
    %13 = vector.broadcast %cst_11 : f32 to vector<1x128xf32>
    %14 = arith.addf %12, %13 : vector<1x128xf32>
    %15 = math.rsqrt %14 : vector<1x128xf32>
    %16 = arith.mulf %15, %1 : vector<1x128xf32>
    %17 = arith.mulf %5, %16 : vector<1x128xf32>
    %18 = arith.subf %2, %17 : vector<1x128xf32>
    %19 = vector.shape_cast %16 : vector<1x128xf32> to vector<1x1x128xf32>
    %20 = vector.broadcast %19 : vector<1x1x128xf32> to vector<1x16x128xf32>
    %21 = arith.mulf %0, %20 : vector<1x16x128xf32>
    %22 = vector.shape_cast %18 : vector<1x128xf32> to vector<1x1x128xf32>
    %23 = vector.broadcast %22 : vector<1x1x128xf32> to vector<1x16x128xf32>
    %24 = arith.addf %21, %23 : vector<1x16x128xf32>
    %cst_12 = arith.constant 0.000000e+00 : f32
    %25 = vector.broadcast %cst_12 : f32 to vector<1x16x128xf32>
    %26 = arith.maximumf %24, %25 : vector<1x16x128xf32>
    %c0_13 = arith.constant 0 : index
    %c0_14 = arith.constant 0 : index
    %27 = vector.load %arg6[%c0_13, %c0_14] : memref<1x128xf32, #tpu.memory_space<vmem>>, vector<1x128xf32>
    %28 = vector.shape_cast %27 : vector<1x128xf32> to vector<1x1x128xf32>
    %29 = vector.shape_cast %28 : vector<1x1x128xf32> to vector<1x1x128xf32>
    %30 = vector.broadcast %29 : vector<1x1x128xf32> to vector<1x16x128xf32>
    %c0_15 = arith.constant 0 : index
    %c0_16 = arith.constant 0 : index
    %c0_17 = arith.constant 0 : index
    %31 = vector.load %arg9[%c0_15, %c0_16, %c0_17] : memref<1x16x128xf32, #tpu.memory_space<vmem>>, vector<1x16x128xf32>
    tpu.vector_store %arg9[%c0_15, %c0_16, %c0_17], %30 {strides = array<i32>} : memref<1x16x128xf32, #tpu.memory_space<vmem>>, vector<1x16x128xf32>,
    %32 = vector.shape_cast %26 : vector<1x16x128xf32> to vector<16x128xf32>
    %c0_18 = arith.constant 0 : index
    %c0_19 = arith.constant 0 : index
    %c0_20 = arith.constant 0 : index
    %33 = vector.load %arg5[%c0_18, %c0_19, %c0_20] : memref<3x128x128xf32, #tpu.memory_space<vmem>>, vector<1x128x128xf32>
    %34 = vector.shape_cast %33 : vector<1x128x128xf32> to vector<128x128xf32>
    %cst_21 = arith.constant dense<0.000000e+00> : vector<16x128xf32>
    %35 = tpu.matmul %32, %34, %cst_21 {dimension_numbers = #tpu.dot_dimension_numbers<[1], [0], [0], [1], [0, 0, 1, 1], [], []>} : vector<16x128xf32>, vector<128x128xf32>, vector<16x128xf32> -> vector<16x128xf32>
    %36 = vector.shape_cast %35 : vector<16x128xf32> to vector<1x16x128xf32>
    %c0_22 = arith.constant 0 : index
    %c1_23 = arith.constant 1 : index
    %c0_24 = arith.constant 0 : index
    %37 = vector.load %arg9[%c0_22, %c1_23, %c0_24] : memref<1x16x128xf32, #tpu.memory_space<vmem>>, vector<1x15x128xf32>
    %38 = vector.extract_strided_slice %36 {offsets = [0, 0, 0], sizes = [1, 15, 128], strides = [1, 1, 1]} : vector<1x16x128xf32> to vector<1x15x128xf32>
    %39 = arith.addf %37, %38 : vector<1x15x128xf32>
    %c0_25 = arith.constant 0 : index
    %c1_26 = arith.constant 1 : index
    %c0_27 = arith.constant 0 : index
    %40 = vector.load %arg9[%c0_25, %c1_26, %c0_27] : memref<1x16x128xf32, #tpu.memory_space<vmem>>, vector<1x15x128xf32>
    tpu.vector_store %arg9[%c0_25, %c1_26, %c0_27], %39 {strides = array<i32>} : memref<1x16x128xf32, #tpu.memory_space<vmem>>, vector<1x15x128xf32>,
    %c1_28 = arith.constant 1 : index
    %c0_29 = arith.constant 0 : index
    %c0_30 = arith.constant 0 : index
    %41 = vector.load %arg5[%c1_28, %c0_29, %c0_30] : memref<3x128x128xf32, #tpu.memory_space<vmem>>, vector<1x128x128xf32>
    %42 = vector.shape_cast %41 : vector<1x128x128xf32> to vector<128x128xf32>
    %cst_31 = arith.constant dense<0.000000e+00> : vector<16x128xf32>
    %43 = tpu.matmul %32, %42, %cst_31 {dimension_numbers = #tpu.dot_dimension_numbers<[1], [0], [0], [1], [0, 0, 1, 1], [], []>} : vector<16x128xf32>, vector<128x128xf32>, vector<16x128xf32> -> vector<16x128xf32>
    %44 = vector.shape_cast %43 : vector<16x128xf32> to vector<1x16x128xf32>
    %c0_32 = arith.constant 0 : index
    %c0_33 = arith.constant 0 : index
    %c0_34 = arith.constant 0 : index
    %45 = vector.load %arg9[%c0_32, %c0_33, %c0_34] : memref<1x16x128xf32, #tpu.memory_space<vmem>>, vector<1x16x128xf32>
    %46 = arith.addf %45, %44 : vector<1x16x128xf32>
    %c0_35 = arith.constant 0 : index
    %c0_36 = arith.constant 0 : index
    %c0_37 = arith.constant 0 : index
    %47 = vector.load %arg9[%c0_35, %c0_36, %c0_37] : memref<1x16x128xf32, #tpu.memory_space<vmem>>, vector<1x16x128xf32>
    tpu.vector_store %arg9[%c0_35, %c0_36, %c0_37], %46 {strides = array<i32>} : memref<1x16x128xf32, #tpu.memory_space<vmem>>, vector<1x16x128xf32>,
    %c2 = arith.constant 2 : index
    %c0_38 = arith.constant 0 : index
    %c0_39 = arith.constant 0 : index
    %48 = vector.load %arg5[%c2, %c0_38, %c0_39] : memref<3x128x128xf32, #tpu.memory_space<vmem>>, vector<1x128x128xf32>
    %49 = vector.shape_cast %48 : vector<1x128x128xf32> to vector<128x128xf32>
    %cst_40 = arith.constant dense<0.000000e+00> : vector<16x128xf32>
    %50 = tpu.matmul %32, %49, %cst_40 {dimension_numbers = #tpu.dot_dimension_numbers<[1], [0], [0], [1], [0, 0, 1, 1], [], []>} : vector<16x128xf32>, vector<128x128xf32>, vector<16x128xf32> -> vector<16x128xf32>
    %51 = vector.shape_cast %50 : vector<16x128xf32> to vector<1x16x128xf32>
    %c0_41 = arith.constant 0 : index
    %c0_42 = arith.constant 0 : index
    %c0_43 = arith.constant 0 : index
    %52 = vector.load %arg9[%c0_41, %c0_42, %c0_43] : memref<1x16x128xf32, #tpu.memory_space<vmem>>, vector<1x15x128xf32>
    %53 = vector.extract_strided_slice %51 {offsets = [0, 1, 0], sizes = [1, 15, 128], strides = [1, 1, 1]} : vector<1x16x128xf32> to vector<1x15x128xf32>
    %54 = arith.addf %52, %53 : vector<1x15x128xf32>
    %c0_44 = arith.constant 0 : index
    %c0_45 = arith.constant 0 : index
    %c0_46 = arith.constant 0 : index
    %55 = vector.load %arg9[%c0_44, %c0_45, %c0_46] : memref<1x16x128xf32, #tpu.memory_space<vmem>>, vector<1x15x128xf32>
    tpu.vector_store %arg9[%c0_44, %c0_45, %c0_46], %54 {strides = array<i32>} : memref<1x16x128xf32, #tpu.memory_space<vmem>>, vector<1x15x128xf32>,
    %c0_47 = arith.constant 0 : index
    %c0_48 = arith.constant 0 : index
    %c0_49 = arith.constant 0 : index
    %56 = vector.load %arg9[%c0_47, %c0_48, %c0_49] : memref<1x16x128xf32, #tpu.memory_space<vmem>>, vector<1x16x128xf32>
    %c0_50 = arith.constant 0 : index
    %c0_51 = arith.constant 0 : index
    %c0_52 = arith.constant 0 : index
    %57 = vector.load %arg7[%c0_50, %c0_51, %c0_52] : memref<1x16x128xf32, #tpu.memory_space<vmem>>, vector<1x16x128xf32>
    tpu.vector_store %arg7[%c0_50, %c0_51, %c0_52], %56 {strides = array<i32>} : memref<1x16x128xf32, #tpu.memory_space<vmem>>, vector<1x16x128xf32>,
    %c0_i32 = arith.constant 0 : i32
    %58 = arith.cmpi eq, %arg0, %c0_i32 : i32
    %59 = arith.extui %58 : i1 to i32
    %c0_i32_53 = arith.constant 0 : i32
    %60 = arith.cmpi ne, %59, %c0_i32_53 : i32
    scf.if %60 {
      %cst_64 = arith.constant 0.000000e+00 : f32
      %73 = vector.broadcast %cst_64 : f32 to vector<2x128xf32>
      %c0_65 = arith.constant 0 : index
      %c0_66 = arith.constant 0 : index
      %74 = vector.load %arg8[%c0_65, %c0_66] : memref<2x128xf32, #tpu.memory_space<vmem>>, vector<2x128xf32>
      tpu.vector_store %arg8[%c0_65, %c0_66], %73 {strides = array<i32>} : memref<2x128xf32, #tpu.memory_space<vmem>>, vector<2x128xf32>,
    } else {
    }
    %61 = vector.shape_cast %56 : vector<1x16x128xf32> to vector<16x128xf32>
    %c0_54 = arith.constant 0 : index
    %c0_55 = arith.constant 0 : index
    %62 = vector.load %arg8[%c0_54, %c0_55] : memref<2x128xf32, #tpu.memory_space<vmem>>, vector<1x128xf32>
    %cst_56 = arith.constant dense<0.000000e+00> : vector<128xf32>
    %63 = vector.multi_reduction <add>, %61, %cst_56 [0] : vector<16x128xf32> to vector<128xf32>
    %64 = vector.shape_cast %63 : vector<128xf32> to vector<1x128xf32>
    %65 = arith.addf %62, %64 : vector<1x128xf32>
    %c0_57 = arith.constant 0 : index
    %c0_58 = arith.constant 0 : index
    %66 = vector.load %arg8[%c0_57, %c0_58] : memref<2x128xf32, #tpu.memory_space<vmem>>, vector<1x128xf32>
    tpu.vector_store %arg8[%c0_57, %c0_58], %65 {strides = array<i32>} : memref<2x128xf32, #tpu.memory_space<vmem>>, vector<1x128xf32>,
    %c1_59 = arith.constant 1 : index
    %c0_60 = arith.constant 0 : index
    %67 = vector.load %arg8[%c1_59, %c0_60] : memref<2x128xf32, #tpu.memory_space<vmem>>, vector<1x128xf32>
    %68 = arith.mulf %61, %61 : vector<16x128xf32>
    %cst_61 = arith.constant dense<0.000000e+00> : vector<128xf32>
    %69 = vector.multi_reduction <add>, %68, %cst_61 [0] : vector<16x128xf32> to vector<128xf32>
    %70 = vector.shape_cast %69 : vector<128xf32> to vector<1x128xf32>
    %71 = arith.addf %67, %70 : vector<1x128xf32>
    %c1_62 = arith.constant 1 : index
    %c0_63 = arith.constant 0 : index
    %72 = vector.load %arg8[%c1_62, %c0_63] : memref<2x128xf32, #tpu.memory_space<vmem>>, vector<1x128xf32>
    tpu.vector_store %arg8[%c1_62, %c0_63], %71 {strides = array<i32>} : memref<2x128xf32, #tpu.memory_space<vmem>>, vector<1x128xf32>,
    return
  }
  func.func @transform_0(%arg0: i32) -> (i32, i32, i32) {
    %c0_i32 = arith.constant 0 : i32
    %c0_i32_0 = arith.constant 0 : i32
    %c0_i32_1 = arith.constant 0 : i32
    return %arg0, %c0_i32, %c0_i32_0 : i32, i32, i32
  }
  func.func @transform_1(%arg0: i32) -> (i32, i32) {
    %c0_i32 = arith.constant 0 : i32
    %c0_i32_0 = arith.constant 0 : i32
    %c0_i32_1 = arith.constant 0 : i32
    return %c0_i32, %c0_i32_0 : i32, i32
  }
  func.func @transform_2(%arg0: i32) -> (i32, i32) {
    %c0_i32 = arith.constant 0 : i32
    %c0_i32_0 = arith.constant 0 : i32
    %c0_i32_1 = arith.constant 0 : i32
    return %c0_i32, %c0_i32_0 : i32, i32
  }
  func.func @transform_3(%arg0: i32) -> (i32, i32) {
    %c0_i32 = arith.constant 0 : i32
    %c0_i32_0 = arith.constant 0 : i32
    %c0_i32_1 = arith.constant 0 : i32
    return %c0_i32, %c0_i32_0 : i32, i32
  }
  func.func @transform_4(%arg0: i32) -> (i32, i32, i32) {
    %c0_i32 = arith.constant 0 : i32
    %c0_i32_0 = arith.constant 0 : i32
    %c0_i32_1 = arith.constant 0 : i32
    %c0_i32_2 = arith.constant 0 : i32
    return %c0_i32, %c0_i32_0, %c0_i32_1 : i32, i32, i32
  }
  func.func @transform_5(%arg0: i32) -> (i32, i32) {
    %c0_i32 = arith.constant 0 : i32
    %c0_i32_0 = arith.constant 0 : i32
    %c0_i32_1 = arith.constant 0 : i32
    return %c0_i32, %c0_i32_0 : i32, i32
  }
  func.func @transform_6(%arg0: i32) -> (i32, i32, i32) {
    %c0_i32 = arith.constant 0 : i32
    %c0_i32_0 = arith.constant 0 : i32
    %c0_i32_1 = arith.constant 0 : i32
    return %arg0, %c0_i32, %c0_i32_0 : i32, i32, i32
  }
  func.func @transform_7(%arg0: i32) -> (i32, i32) {
    %c0_i32 = arith.constant 0 : i32
    %c0_i32_0 = arith.constant 0 : i32
    %c0_i32_1 = arith.constant 0 : i32
    return %c0_i32, %c0_i32_0 : i32, i32
  }
}

module attributes {stable_mosaic.version = 11 : i64} {
  func.func @_bn_relu_kernel(%arg0: i32, %arg1: memref<1x16x128xf32, #tpu.memory_space<vmem>>, %arg2: memref<2x128xf32, #tpu.memory_space<vmem>>, %arg3: memref<1x128xf32, #tpu.memory_space<vmem>>, %arg4: memref<1x128xf32, #tpu.memory_space<vmem>>, %arg5: memref<1x16x128xf32, #tpu.memory_space<vmem>>) attributes {dimension_semantics = [#tpu.dimension_semantics<parallel>], iteration_bounds = array<i64: 2>, scalar_prefetch = 0 : i64, scratch_operands = 0 : i64, tpu.core_type = #tpu.core_type<tc>, window_params = [{transform_indices = @transform_0, window_bounds = array<i64: 1, 16, 128>}, {pipeline_mode = #tpu.pipeline_mode<synchronous>, transform_indices = @transform_1, window_bounds = array<i64: 2, 128>}, {pipeline_mode = #tpu.pipeline_mode<synchronous>, transform_indices = @transform_2, window_bounds = array<i64: 1, 128>}, {pipeline_mode = #tpu.pipeline_mode<synchronous>, transform_indices = @transform_3, window_bounds = array<i64: 1, 128>}, {transform_indices = @transform_4, window_bounds = array<i64: 1, 16, 128>}]} {
    %c0 = arith.constant 0 : index
    %c0_0 = arith.constant 0 : index
    %c0_1 = arith.constant 0 : index
    %0 = vector.load %arg1[%c0, %c0_0, %c0_1] : memref<1x16x128xf32, #tpu.memory_space<vmem>>, vector<1x16x128xf32>
    %c0_2 = arith.constant 0 : index
    %c0_3 = arith.constant 0 : index
    %1 = vector.load %arg3[%c0_2, %c0_3] : memref<1x128xf32, #tpu.memory_space<vmem>>, vector<1x128xf32>
    %c0_4 = arith.constant 0 : index
    %c0_5 = arith.constant 0 : index
    %2 = vector.load %arg4[%c0_4, %c0_5] : memref<1x128xf32, #tpu.memory_space<vmem>>, vector<1x128xf32>
    %c0_6 = arith.constant 0 : index
    %c0_7 = arith.constant 0 : index
    %3 = vector.load %arg2[%c0_6, %c0_7] : memref<2x128xf32, #tpu.memory_space<vmem>>, vector<1x128xf32>
    %cst = arith.constant 3.125000e-02 : f32
    %4 = vector.broadcast %cst : f32 to vector<1x128xf32>
    %5 = arith.mulf %3, %4 : vector<1x128xf32>
    %c1 = arith.constant 1 : index
    %c0_8 = arith.constant 0 : index
    %6 = vector.load %arg2[%c1, %c0_8] : memref<2x128xf32, #tpu.memory_space<vmem>>, vector<1x128xf32>
    %cst_9 = arith.constant 3.125000e-02 : f32
    %7 = vector.broadcast %cst_9 : f32 to vector<1x128xf32>
    %8 = arith.mulf %6, %7 : vector<1x128xf32>
    %9 = arith.mulf %5, %5 : vector<1x128xf32>
    %10 = arith.subf %8, %9 : vector<1x128xf32>
    %cst_10 = arith.constant 0.000000e+00 : f32
    %11 = vector.broadcast %cst_10 : f32 to vector<1x128xf32>
    %12 = arith.maximumf %10, %11 : vector<1x128xf32>
    %cst_11 = arith.constant 9.99999974E-6 : f32
    %13 = vector.broadcast %cst_11 : f32 to vector<1x128xf32>
    %14 = arith.addf %12, %13 : vector<1x128xf32>
    %15 = math.rsqrt %14 : vector<1x128xf32>
    %16 = arith.mulf %15, %1 : vector<1x128xf32>
    %17 = arith.mulf %5, %16 : vector<1x128xf32>
    %18 = arith.subf %2, %17 : vector<1x128xf32>
    %19 = vector.shape_cast %16 : vector<1x128xf32> to vector<1x1x128xf32>
    %20 = vector.broadcast %19 : vector<1x1x128xf32> to vector<1x16x128xf32>
    %21 = arith.mulf %0, %20 : vector<1x16x128xf32>
    %22 = vector.shape_cast %18 : vector<1x128xf32> to vector<1x1x128xf32>
    %23 = vector.broadcast %22 : vector<1x1x128xf32> to vector<1x16x128xf32>
    %24 = arith.addf %21, %23 : vector<1x16x128xf32>
    %cst_12 = arith.constant 0.000000e+00 : f32
    %25 = vector.broadcast %cst_12 : f32 to vector<1x16x128xf32>
    %26 = arith.maximumf %24, %25 : vector<1x16x128xf32>
    %c0_13 = arith.constant 0 : index
    %c0_14 = arith.constant 0 : index
    %c0_15 = arith.constant 0 : index
    %27 = vector.load %arg5[%c0_13, %c0_14, %c0_15] : memref<1x16x128xf32, #tpu.memory_space<vmem>>, vector<1x16x128xf32>
    tpu.vector_store %arg5[%c0_13, %c0_14, %c0_15], %26 {strides = array<i32>} : memref<1x16x128xf32, #tpu.memory_space<vmem>>, vector<1x16x128xf32>,
    return
  }
  func.func @transform_0(%arg0: i32) -> (i32, i32, i32) {
    %c0_i32 = arith.constant 0 : i32
    %c0_i32_0 = arith.constant 0 : i32
    %c0_i32_1 = arith.constant 0 : i32
    return %arg0, %c0_i32, %c0_i32_0 : i32, i32, i32
  }
  func.func @transform_1(%arg0: i32) -> (i32, i32) {
    %c0_i32 = arith.constant 0 : i32
    %c0_i32_0 = arith.constant 0 : i32
    %c0_i32_1 = arith.constant 0 : i32
    return %c0_i32, %c0_i32_0 : i32, i32
  }
  func.func @transform_2(%arg0: i32) -> (i32, i32) {
    %c0_i32 = arith.constant 0 : i32
    %c0_i32_0 = arith.constant 0 : i32
    %c0_i32_1 = arith.constant 0 : i32
    return %c0_i32, %c0_i32_0 : i32, i32
  }
  func.func @transform_3(%arg0: i32) -> (i32, i32) {
    %c0_i32 = arith.constant 0 : i32
    %c0_i32_0 = arith.constant 0 : i32
    %c0_i32_1 = arith.constant 0 : i32
    return %c0_i32, %c0_i32_0 : i32, i32
  }
  func.func @transform_4(%arg0: i32) -> (i32, i32, i32) {
    %c0_i32 = arith.constant 0 : i32
    %c0_i32_0 = arith.constant 0 : i32
    %c0_i32_1 = arith.constant 0 : i32
    return %arg0, %c0_i32, %c0_i32_0 : i32, i32, i32
  }
}

</mosaic_0001>

<bundles_post_ra>
// kernel: residual_block_pallas.7
= control target key start
LH: loop header
LB: loop body
LE: loop exit
PB: predicated region body
PF: predicated region fallthrough
CT: control target
= control target key end

     0   :  { %s346_s15 = smov 0   ;;  %s375_s0 = inlined_call_operand.vmem [shape: f32[2,16,128], index: 0, kind: input, shape index: {}]   ;;  %s376_s1 = inlined_call_operand.vmem [shape: f32[2,128], index: 1, kind: input, shape index: {}]   ;;  %s377_s2 = inlined_call_operand.vmem [shape: f32[1,128], index: 2, kind: input, shape index: {}]   ;;  %s378_s3 = inlined_call_operand.vmem [shape: f32[1,128], index: 3, kind: input, shape index: {}]   ;;  %s379_s4 = inlined_call_operand.vmem [shape: f32[2,16,128], index: 4, kind: output, shape index: {}]  }
   0x1 LB: > { %s290_s16 = sadd.s32 4294967295, %s319_s15   ;;  %p294_p0 = scmp.ge.s32.totalorder %s319_s15, 1  ;;  %s319_s15 = sphi %s346_s15, %s14_s15  }
   0x2   : > { %p162_p1 = scmp.lt.s32.totalorder %s319_s15, 3 }
   0x4   : > { %p163_p2 = pnand %p294_p0, %p162_p1 }
   0x5   : > { %p188_p3 = scmp.lt.s32.totalorder (!%p163_p2), %s290_s16, 1 }
   0x6   : > { %166 = sbr.rel (%p163_p2) target bundleno = 54 (0x36), region = 36 }
   0xb   : > { %v202_v0 = vld [vmem:[%s376_s1] sm:$0x1]  ;;  %v204_v1 = vld [vmem:[%s376_s1 + $0x1] sm:$0x1]  ;;  %s381_s16 = smov (!%p188_p3, %s290_s16), 1 }
   0xc   : > { %v203_v2 = vmul.f32 0.03125, %v202_v0  ;;  %v205_v3 = vmul.f32 0.03125, %v204_v1  ;;  %s301_s21 = sshll.u32 %s381_s16, 4  ;;  %v200_v13 = vld [vmem:[%s377_s2] sm:$0x1] }
   0xd   : > { %s192_s26 = scalar_lea.vmem %s375_s0, %s301_s21  ;;  %v201_v19 = vld [vmem:[%s378_s3] sm:$0x1]  ;;  %s197_s5 = scalar_lea.vmem %s379_s4, %s301_s21 }
   0xe   : > { %v206_v4 = vmul.f32 %v203_v2, %v203_v2  ;;  %v198_v17 = vld [vmem:[%s192_s26] sm:$0xff]  ;;  %v199_v18 = vld [vmem:[%s192_s26 + $0x8] sm:$0xff] }
  0x10   : > { %v207_v5 = vsub.f32 %v205_v3, %v206_v4 }
  0x12   : > { %v208_v6 = vmax.f32 %v207_v5, 0.0 }
  0x14   : > { %v209_v7 = vadd.f32 1e-05, %v208_v6 }
  0x16   : > { %311 = vrsqrt.f32 %v209_v7  ;;  %vm216_vm0 = vweird.f32 %v209_v7 }
  0x1c   : > { %v312_v8 = vpop.eup %311 }
  0x1d   : > { %v211_v9 = vmul.f32 %v312_v8, %v209_v7  ;;  %vm217_vm1 = vweird.f32 %v312_v8 }
  0x1e   : > { %vm218_vm2 = vmor %vm216_vm0, %vm217_vm1 }
  0x1f   : > { %v212_v10 = vmul.f32 %v312_v8, %v211_v9 }
  0x21   : > { %v213_v11 = vmul.f32 0.5, %v212_v10 }
  0x23   : > { %v214_v12 = vsub.f32 1.5, %v213_v11 }
  0x25   : > { %v215_v14 = vmul.f32 %v312_v8, %v214_v12 }
  0x27   : > { %v219_v15 = vsel %vm218_vm2, %v312_v8, %v215_v14 }
  0x28   : > { %v220_v16 = vmul.f32 %v219_v15, %v200_v13 }
  0x2a   : > { %v221_v20 = vmul.f32 %v220_v16, %v203_v2  ;;  %v223_v21 = vperm.slane %v220_v16, 0 }
  0x2c   : > { %v222_v22 = vsub.f32 %v201_v19, %v221_v20  ;;  %v224_v23 = vmul.f32 %v223_v21, %v198_v17  ;;  %v225_v24 = vmul.f32 %v223_v21, %v199_v18 }
  0x2e   : > { %v227_v25 = vperm.slane %v222_v22, 0 }
  0x30   : > { %v229_v26 = vadd.f32 %v227_v25, %v224_v23  ;;  %v230_v27 = vadd.f32 %v227_v25, %v225_v24 }
  0x32   : > { %v231_v28 = vmax.f32 %v229_v26, 0.0  ;;  %v232_v29 = vmax.f32 %v230_v27, 0.0 }
  0x34   : > { %233 = vst [vmem:[%s197_s5] sm:$0xff] %v231_v28 }
  0x35   : > { %234 = vst [vmem:[%s197_s5 + $0x8] sm:$0xff] %v232_v29 }
  0x36 PF: > { %s14_s15 = sadd.s32 1, %s319_s15  }
  0x37   : > { %p11_p4 = scmp.ge.s32.totalorder %s14_s15, 4  }
  0x39   :  { %13 = sbr.rel (!%p11_p4) target bundleno = 1 (0x1), region = 66 }

// kernel: residual_block_pallas.4
= control target key start
LH: loop header
LB: loop body
LE: loop exit
PB: predicated region body
PF: predicated region fallthrough
CT: control target
= control target key end

     0   :  { %s547_s15 = smov 0   ;;  %s740_s0 = inlined_call_operand.vmem [shape: f32[2,16,128], index: 0, kind: input, shape index: {}]   ;;  %s741_s1 = inlined_call_operand.vmem [shape: f32[3,128,128], index: 1, kind: input, shape index: {}]   ;;  %s742_s2 = inlined_call_operand.vmem [shape: f32[1,128], index: 2, kind: input, shape index: {}]   ;;  %s743_s3 = inlined_call_operand.vmem [shape: f32[2,16,128], index: 3, kind: output, shape index: {0}]   ;;  %s744_s4 = inlined_call_operand.vmem [shape: f32[2,128], index: 4, kind: output, shape index: {1}]  }
   0x1 LB: > { %s553_s16 = sadd.s32 4294967295, %s519_s15   ;;  %p445_p0 = scmp.ge.s32.totalorder %s519_s15, 1  ;;  %s519_s15 = sphi %s547_s15, %s15_s15  }
   0x2   : > { %p160_p1 = scmp.lt.s32.totalorder %s519_s15, 3 }
   0x4   : > { %p161_p2 = pnand %p445_p0, %p160_p1 }
   0x5   : > { %p186_p3 = scmp.lt.s32.totalorder (!%p161_p2), %s553_s16, 1  ;;  %p482_p4 = scmp.ne.s32.totalorder (!%p161_p2), %s553_s16, 0 }
   0x6   : > { %164 = sbr.rel (%p161_p2) target bundleno = 227 (0xe3), region = 32 }
   0xb   : > { %v219_v0 = vld [vmem:[%s741_s1 + $0x78] sm:$0xff]  ;;  %v218_v2 = vld [vmem:[%s741_s1 + $0x70] sm:$0xff]  ;;  %v217_v4 = vld [vmem:[%s741_s1 + $0x68] sm:$0xff]  ;;  %s660_s9 = scalar_select %p186_p3, %s553_s16, 1  ;;  %vm339_vm0 = vcmask 1046528  }
   0xc   : > { %v481_v1 = vld [vmem:[%s741_s1 + $0x178] sm:$0xff]  ;;  %220 = vmatpush.msra.mxu0 %v219_v0  ;;  %487 = vmatpush.msra.mxu3 %v219_v0  ;;  %v480_v3 = vld [vmem:[%s741_s1 + $0x170] sm:$0xff]  ;;  %v479_v5 = vld [vmem:[%s741_s1 + $0x168] sm:$0xff] }
   0xd   : > { %312 = vmatpush.msra.mxu2 %v481_v1  ;;  %v465_v6 = vld [vmem:[%s741_s1 + $0xf8] sm:$0xff]  ;;  %v216_v7 = vld [vmem:[%s741_s1 + $0x60] sm:$0xff]  ;;  %v464_v8 = vld [vmem:[%s741_s1 + $0xf0] sm:$0xff]  ;;  %s485_s24 = sshll.u32 %s660_s9, 4 }
   0xe   : > { %221 = vmatpush.msra.mxu0 %v218_v2  ;;  %488 = vmatpush.msra.mxu3 %v218_v2  ;;  %v478_v9 = vld [vmem:[%s741_s1 + $0x160] sm:$0xff]  ;;  %v463_v10 = vld [vmem:[%s741_s1 + $0xe8] sm:$0xff]  ;;  %v215_v11 = vld [vmem:[%s741_s1 + $0x58] sm:$0xff]  ;;  %s190_s10 = scalar_lea.vmem %s740_s0, %s485_s24  ;;  %s195_s28 = scalar_lea.vmem %s743_s3, %s485_s24 }
   0xf   : > { %313 = vmatpush.msra.mxu2 %v480_v3  ;;  %266 = vmatpush.msra.mxu1 %v465_v6  ;;  %v477_v12 = vld [vmem:[%s741_s1 + $0x158] sm:$0xff]  ;;  %v462_v13 = vld [vmem:[%s741_s1 + $0xe0] sm:$0xff]  ;;  %v214_v14 = vld [vmem:[%s741_s1 + $0x50] sm:$0xff] }
  0x10   : > { %222 = vmatpush.msra.mxu0 %v217_v4  ;;  %489 = vmatpush.msra.mxu3 %v217_v4  ;;  %v476_v15 = vld [vmem:[%s741_s1 + $0x150] sm:$0xff]  ;;  %v461_v16 = vld [vmem:[%s741_s1 + $0xd8] sm:$0xff]  ;;  %v213_v17 = vld [vmem:[%s741_s1 + $0x48] sm:$0xff] }
  0x11   : > { %314 = vmatpush.msra.mxu2 %v479_v5  ;;  %267 = vmatpush.msra.mxu1 %v464_v8  ;;  %v475_v18 = vld [vmem:[%s741_s1 + $0x148] sm:$0xff]  ;;  %v460_v19 = vld [vmem:[%s741_s1 + $0xd0] sm:$0xff]  ;;  %v212_v20 = vld [vmem:[%s741_s1 + $0x40] sm:$0xff] }
  0x12   : > { %223 = vmatpush.msra.mxu0 %v216_v7  ;;  %490 = vmatpush.msra.mxu3 %v216_v7  ;;  %v474_v21 = vld [vmem:[%s741_s1 + $0x140] sm:$0xff]  ;;  %v459_v22 = vld [vmem:[%s741_s1 + $0xc8] sm:$0xff]  ;;  %v211_v23 = vld [vmem:[%s741_s1 + $0x38] sm:$0xff] }
  0x13   : > { %315 = vmatpush.msra.mxu2 %v478_v9  ;;  %268 = vmatpush.msra.mxu1 %v463_v10  ;;  %v473_v24 = vld [vmem:[%s741_s1 + $0x138] sm:$0xff]  ;;  %v458_v25 = vld [vmem:[%s741_s1 + $0xc0] sm:$0xff]  ;;  %v210_v26 = vld [vmem:[%s741_s1 + $0x30] sm:$0xff] }
  0x14   : > { %224 = vmatpush.msra.mxu0 %v215_v11  ;;  %491 = vmatpush.msra.mxu3 %v215_v11  ;;  %v472_v27 = vld [vmem:[%s741_s1 + $0x130] sm:$0xff]  ;;  %v457_v28 = vld [vmem:[%s741_s1 + $0xb8] sm:$0xff]  ;;  %v512_v29 = vld [vmem:[%s742_s2] ss:$0 sm:$0xff] }
  0x15   : > { %316 = vmatpush.msra.mxu2 %v477_v12  ;;  %269 = vmatpush.msra.mxu1 %v462_v13  ;;  %v209_v30 = vld [vmem:[%s741_s1 + $0x28] sm:$0xff]  ;;  %v456_v32 = vld [vmem:[%s741_s1 + $0xb0] sm:$0xff]  ;;  %202 = vst [vmem:[#allocation2] sm:$0xff] %v512_v29  ;;  %v208_v33 = vld [vmem:[%s741_s1 + $0x20] sm:$0xff] }
  0x16   : > { %225 = vmatpush.msra.mxu0 %v214_v14  ;;  %492 = vmatpush.msra.mxu3 %v214_v14  ;;  %v471_v31 = vld [vmem:[%s741_s1 + $0x128] sm:$0xff]  ;;  %203 = vst [vmem:[#allocation2 + $0x8] sm:$0xff] %v512_v29  ;;  %v470_v34 = vld [vmem:[%s741_s1 + $0x120] sm:$0xff]  ;;  %v207_v36 = vld [vmem:[%s741_s1 + $0x18] sm:$0xff] }
  0x17   : > { %317 = vmatpush.msra.mxu2 %v476_v15  ;;  %270 = vmatpush.msra.mxu1 %v461_v16  ;;  %v455_v35 = vld [vmem:[%s741_s1 + $0xa8] sm:$0xff]  ;;  %v469_v37 = vld [vmem:[%s741_s1 + $0x118] sm:$0xff]  ;;  %v454_v38 = vld [vmem:[%s741_s1 + $0xa0] sm:$0xff] }
  0x18   : > { %226 = vmatpush.msra.mxu0 %v213_v17  ;;  %493 = vmatpush.msra.mxu3 %v213_v17  ;;  %v206_v39 = vld [vmem:[%s741_s1 + $0x10] sm:$0xff]  ;;  %v453_v41 = vld [vmem:[%s741_s1 + $0x98] sm:$0xff]  ;;  %v205_v42 = vld [vmem:[%s741_s1 + $0x8] sm:$0xff] }
  0x19   : > { %318 = vmatpush.msra.mxu2 %v475_v18  ;;  %271 = vmatpush.msra.mxu1 %v460_v19  ;;  %v468_v40 = vld [vmem:[%s741_s1 + $0x110] sm:$0xff]  ;;  %v467_v43 = vld [vmem:[%s741_s1 + $0x108] sm:$0xff]  ;;  %v204_v45 = vld [vmem:[%s741_s1] sm:$0xff] }
  0x1a   : > { %227 = vmatpush.msra.mxu0 %v212_v20  ;;  %494 = vmatpush.msra.mxu3 %v212_v20  ;;  %v452_v44 = vld [vmem:[%s741_s1 + $0x90] sm:$0xff]  ;;  %v196_v46 = vld [vmem:[%s190_s10] sm:$0xff]  ;;  %v197_v47 = vld [vmem:[%s190_s10 + $0x8] sm:$0xff] }
  0x1b   : > { %319 = vmatpush.msra.mxu2 %v474_v21  ;;  %272 = vmatpush.msra.mxu1 %v459_v22  ;;  %v466_v48 = vld [vmem:[%s741_s1 + $0x100] sm:$0xff]  ;;  %v451_v49 = vld [vmem:[%s741_s1 + $0x88] sm:$0xff] }
  0x1c   : > { %228 = vmatpush.msra.mxu0 %v211_v23  ;;  %495 = vmatpush.msra.mxu3 %v211_v23  ;;  %v450_v50 = vld [vmem:[%s741_s1 + $0x80] sm:$0xff] }
  0x1d   : > { %320 = vmatpush.msra.mxu2 %v473_v24  ;;  %273 = vmatpush.msra.mxu1 %v458_v25  ;;  %v243_v51 = vld [vmem:[#allocation2 + $0x1] sm:$0xff]  ;;  %v244_v54 = vld [vmem:[#allocation2 + $0x9] sm:$0x7f] }
  0x1e   : > { %229 = vmatpush.msra.mxu0 %v210_v26  ;;  %496 = vmatpush.msra.mxu3 %v210_v26 }
  0x1f   : > { %321 = vmatpush.msra.mxu2 %v472_v27  ;;  %274 = vmatpush.msra.mxu1 %v457_v28 }
  0x20   : > { %230 = vmatpush.msra.mxu0 %v209_v30  ;;  %497 = vmatpush.msra.mxu3 %v209_v30 }
  0x21   : > { %322 = vmatpush.msra.mxu2 %v471_v31  ;;  %275 = vmatpush.msra.mxu1 %v456_v32 }
  0x22   : > { %231 = vmatpush.msra.mxu0 %v208_v33  ;;  %498 = vmatpush.msra.mxu3 %v208_v33 }
  0x23   : > { %323 = vmatpush.msra.mxu2 %v470_v34  ;;  %276 = vmatpush.msra.mxu1 %v455_v35 }
  0x24   : > { %232 = vmatpush.msra.mxu0 %v207_v36  ;;  %499 = vmatpush.msra.mxu3 %v207_v36 }
  0x25   : > { %324 = vmatpush.msra.mxu2 %v469_v37  ;;  %277 = vmatpush.msra.mxu1 %v454_v38 }
  0x26   : > { %233 = vmatpush.msra.mxu0 %v206_v39  ;;  %500 = vmatpush.msra.mxu3 %v206_v39 }
  0x27   : > { %325 = vmatpush.msra.mxu2 %v468_v40  ;;  %278 = vmatpush.msra.mxu1 %v453_v41 }
  0x28   : > { %234 = vmatpush.msra.mxu0 %v205_v42  ;;  %501 = vmatpush.msra.mxu3 %v205_v42 }
  0x29   : > { %326 = vmatpush.msra.mxu2 %v467_v43  ;;  %279 = vmatpush.msra.mxu1 %v452_v44 }
  0x2a   : > { %235 = vmatpush.msra.mxu0 %v204_v45  ;;  %502 = vmatpush.msra.mxu3 %v204_v45 }
  0x2b   : > { %236 = vmatmul.f32.vlgmr.msra.gmra.mxu0 %v196_v46  ;;  %239 = vmatmul.f32.vlgmr.msra.gmra.mxu3 %v197_v47 }
  0x2c   : > { %327 = vmatpush.msra.mxu2 %v466_v48  ;;  %280 = vmatpush.msra.mxu1 %v451_v49 }
  0x2d   : > { %328 = vmatmul.f32.vlgmr.msra.gmra.mxu2 %v196_v46 }
  0x2e   : > { %281 = vmatpush.msra.mxu1 %v450_v50 }
  0x2f   : > { %282 = vmatmul.f32.vlgmr.msra.gmra.mxu1 %v196_v46 }
  0x35   : > { %331 = vmatmul.f32.gmra.mxu2 %v197_v47 }
  0x37   : > { %285 = vmatmul.f32.gmra.mxu1 %v197_v47 }
  0xa8   : > { %v237_v52 = vpop.f32.mrf.mxu0 }
  0xa9   : > { %v245_v53 = vadd.f32 %v243_v51, %v237_v52 }
  0xab   : > { %247 = vst [vmem:[#allocation2 + $0x1] sm:$0xff] %v245_v53 }
  0xac   : > { %v283_v55 = vpop.f32.mrf.mxu1 }
  0xae   : > { %v240_v56 = vpop.f32.mrf.mxu3 }
  0xaf   : > { %v246_v57 = vadd.f32 %v244_v54, %v240_v56 }
  0xb0   : > { %v329_v58 = vpop.f32.mrf.mxu2 }
  0xb1   : > { %248 = vst [vmem:[#allocation2 + $0x9] sm:$0x7f] %v246_v57  ;;  %v340_v60 = vrot.slane %v329_v58, 1 }
  0xb2   : > { %v289_v61 = vld [vmem:[#allocation2] sm:$0xff] }
  0xb3   : > { %v291_v2 = vadd.f32 %v289_v61, %v283_v55 }
  0xb4   : > { %v286_v59 = vpop.f32.mrf.mxu1 }
  0xb8   : > { %v332_v62 = vpop.f32.mrf.mxu2  ;;  %v290_v63 = vld [vmem:[#allocation2 + $0x8] sm:$0xff] }
  0xb9   : > { %v341_v0 = vrot.slane %v332_v62, 1  ;;  %v292_v1 = vadd.f32 %v290_v63, %v286_v59 }
  0xbb   : > { %v342_v3 = vsel %vm339_vm0, %v340_v60, %v341_v0  ;;  %294 = vst [vmem:[#allocation2 + $0x8] sm:$0xff] %v292_v1 }
  0xbc   : > { %v345_v4 = vadd.f32 %v342_v3, %v291_v2 }
  0xbe   : > { %347 = vst [vmem:[#allocation2] sm:$0xff] %v345_v4 }
  0xbf   : > { %351 = vst [vmem:[%s195_s28] sm:$0xff] %v345_v4 }
  0xc2   : > { %v336_v5 = vld [vmem:[#allocation2 + $0x8] sm:$0x7f] }
  0xc3   : > { %v346_v6 = vadd.f32 %v341_v0, %v336_v5 }
  0xc5   : > { %348 = vst [vmem:[#allocation2 + $0x8] sm:$0x7f] %v346_v6 }
  0xc9   : > { %356 = sbr.rel (%p482_p4) target bundleno = 208 (0xd0), region = 36 }
  0xcc   : > { %v350_v7 = vld [vmem:[#allocation2 + $0x8] sm:$0xff] }
  0xcd   : > { %352 = vst [vmem:[%s195_s28 + $0x8] sm:$0xff] %v350_v7 }
  0xce   : > { %v521_v8 = vmov 0.0  }
  0xcf   : > { %357 = vst [vmem:[%s744_s4] sm:$0x3] %v521_v8 }
  0xd0 PF: > { %v359_v9 = vadd.f32 %v350_v7, %v345_v4  ;;  %v369_v10 = vmul.f32 %v345_v4, %v345_v4  ;;  %v370_v11 = vmul.f32 %v350_v7, %v350_v7 }
  0xd2   : > { %v360_v12 = vrot.slane %v359_v9, 4  ;;  %v371_v13 = vadd.f32 %v370_v11, %v369_v10 }
  0xd4   : > { %v361_v14 = vadd.f32 %v360_v12, %v359_v9  ;;  %v372_v15 = vrot.slane %v371_v13, 4 }
  0xd6   : > { %v362_v16 = vrot.slane %v361_v14, 2  ;;  %v373_v17 = vadd.f32 %v372_v15, %v371_v13  ;;  %v358_v22 = vld [vmem:[%s744_s4] sm:$0x1]  ;;  %v368_v25 = vld [vmem:[%s744_s4 + $0x1] sm:$0x1] }
  0xd8   : > { %v363_v18 = vadd.f32 %v362_v16, %v361_v14  ;;  %v374_v19 = vrot.slane %v373_v17, 2 }
  0xda   : > { %v364_v20 = vrot.slane %v363_v18, 1  ;;  %v375_v21 = vadd.f32 %v374_v19, %v373_v17 }
  0xdc   : > { %v365_v23 = vadd.f32 %v364_v20, %v363_v18  ;;  %v376_v24 = vrot.slane %v375_v21, 1 }
  0xde   : > { %v366_v26 = vadd.f32 %v365_v23, %v358_v22  ;;  %v377_v27 = vadd.f32 %v376_v24, %v375_v21 }
  0xe0   : > { %367 = vst [vmem:[%s744_s4] sm:$0x1] %v366_v26  ;;  %v378_v28 = vadd.f32 %v377_v27, %v368_v25 }
  0xe2   : > { %379 = vst [vmem:[%s744_s4 + $0x1] sm:$0x1] %v378_v28 }
  0xe3 PF: > { %s15_s15 = sadd.s32 1, %s519_s15  }
  0xe4   : > { %p12_p5 = scmp.ge.s32.totalorder %s15_s15, 4  }
  0xe6   :  { %14 = sbr.rel (!%p12_p5) target bundleno = 1 (0x1), region = 76 }

// kernel: residual_block_pallas.5
= control target key start
LH: loop header
LB: loop body
LE: loop exit
PB: predicated region body
PF: predicated region fallthrough
CT: control target
= control target key end

     0   :  { %s810_s24 = smov 0   ;;  %s1116_s0 = inlined_call_operand.vmem [shape: f32[2,16,128], index: 0, kind: input, shape index: {}]   ;;  %s1117_s1 = inlined_call_operand.vmem [shape: f32[2,128], index: 1, kind: input, shape index: {}]   ;;  %s1118_s2 = inlined_call_operand.vmem [shape: f32[1,128], index: 2, kind: input, shape index: {}]   ;;  %s1119_s3 = inlined_call_operand.vmem [shape: f32[1,128], index: 3, kind: input, shape index: {}]   ;;  %s1120_s4 = inlined_call_operand.vmem [shape: f32[5,128,128], index: 4, kind: input, shape index: {}]   ;;  %s1121_s5 = inlined_call_operand.vmem [shape: f32[1,128], index: 5, kind: input, shape index: {}]   ;;  %s1122_s6 = inlined_call_operand.vmem [shape: f32[2,16,128], index: 6, kind: output, shape index: {0}]   ;;  %s1123_s7 = inlined_call_operand.vmem [shape: f32[2,128], index: 7, kind: output, shape index: {1}]  }
   0x1 LB: > { %s816_s25 = sadd.s32 4294967295, %s767_s24   ;;  %p659_p0 = scmp.ge.s32.totalorder %s767_s24, 1  ;;  %s767_s24 = sphi %s810_s24, %s18_s24  }
   0x2   : > { %p235_p1 = scmp.lt.s32.totalorder %s767_s24, 3 }
   0x4   : > { %p236_p2 = pnand %p659_p0, %p235_p1 }
   0x5   : > { %p267_p3 = scmp.lt.s32.totalorder (!%p236_p2), %s816_s25, 1  ;;  %p728_p4 = scmp.ne.s32.totalorder (!%p236_p2), %s816_s25, 0 }
   0x6   : > { %239 = sbr.rel (%p236_p2) target bundleno = 271 (0x10f), region = 44 }
   0xb   : > { %v333_v0 = vld [vmem:[%s1120_s4 + $0x78] sm:$0xff]  ;;  %v332_v1 = vld [vmem:[%s1120_s4 + $0x70] sm:$0xff]  ;;  %v331_v3 = vld [vmem:[%s1120_s4 + $0x68] sm:$0xff]  ;;  %s1035_s15 = scalar_select %p267_p3, %s816_s25, 1  ;;  %vm499_vm3 = vcmask 1046528   ;;  %vm553_vm4 = vcmask 1045504  }
   0xc   : > { %334 = vmatpush.msra.mxu0 %v333_v0  ;;  %v679_v2 = vld [vmem:[%s1120_s4 + $0xf8] sm:$0xff]  ;;  %v678_v4 = vld [vmem:[%s1120_s4 + $0xf0] sm:$0xff]  ;;  %v677_v5 = vld [vmem:[%s1120_s4 + $0xe8] sm:$0xff] }
   0xd   : > { %380 = vmatpush.msra.mxu1 %v679_v2  ;;  %v711_v6 = vld [vmem:[%s1120_s4 + $0x1f8] sm:$0xff]  ;;  %v330_v7 = vld [vmem:[%s1120_s4 + $0x60] sm:$0xff]  ;;  %v710_v10 = vld [vmem:[%s1120_s4 + $0x1f0] sm:$0xff]  ;;  %s731_s22 = sshll.u32 %s1035_s15, 4 }
   0xe   : > { %335 = vmatpush.msra.mxu0 %v332_v1  ;;  %472 = vmatpush.msra.mxu3 %v711_v6  ;;  %v695_v8 = vld [vmem:[%s1120_s4 + $0x178] sm:$0xff]  ;;  %v676_v9 = vld [vmem:[%s1120_s4 + $0xe0] sm:$0xff]  ;;  %v694_v12 = vld [vmem:[%s1120_s4 + $0x170] sm:$0xff]  ;;  %s271_s10 = scalar_lea.vmem %s1116_s0, %s731_s22  ;;  %s276_s14 = scalar_lea.vmem %s1122_s6, %s731_s22 }
   0xf   : > { %381 = vmatpush.msra.mxu1 %v678_v4  ;;  %426 = vmatpush.msra.mxu2 %v695_v8  ;;  %v329_v11 = vld [vmem:[%s1120_s4 + $0x58] sm:$0xff]  ;;  %v709_v13 = vld [vmem:[%s1120_s4 + $0x1e8] sm:$0xff]  ;;  %v708_v16 = vld [vmem:[%s1120_s4 + $0x1e0] sm:$0xff] }
  0x10   : > { %336 = vmatpush.msra.mxu0 %v331_v3  ;;  %473 = vmatpush.msra.mxu3 %v710_v10  ;;  %v675_v14 = vld [vmem:[%s1120_s4 + $0xd8] sm:$0xff]  ;;  %v693_v15 = vld [vmem:[%s1120_s4 + $0x168] sm:$0xff]  ;;  %v328_v17 = vld [vmem:[%s1120_s4 + $0x50] sm:$0xff] }
  0x11   : > { %382 = vmatpush.msra.mxu1 %v677_v5  ;;  %427 = vmatpush.msra.mxu2 %v694_v12  ;;  %v692_v18 = vld [vmem:[%s1120_s4 + $0x160] sm:$0xff]  ;;  %v674_v19 = vld [vmem:[%s1120_s4 + $0xd0] sm:$0xff]  ;;  %v707_v20 = vld [vmem:[%s1120_s4 + $0x1d8] sm:$0xff] }
  0x12   : > { %337 = vmatpush.msra.mxu0 %v330_v7  ;;  %474 = vmatpush.msra.mxu3 %v709_v13  ;;  %v327_v21 = vld [vmem:[%s1120_s4 + $0x48] sm:$0xff]  ;;  %v691_v22 = vld [vmem:[%s1120_s4 + $0x158] sm:$0xff]  ;;  %v706_v24 = vld [vmem:[%s1120_s4 + $0x1d0] sm:$0xff] }
  0x13   : > { %383 = vmatpush.msra.mxu1 %v676_v9  ;;  %428 = vmatpush.msra.mxu2 %v693_v15  ;;  %v673_v23 = vld [vmem:[%s1120_s4 + $0xc8] sm:$0xff]  ;;  %v326_v25 = vld [vmem:[%s1120_s4 + $0x40] sm:$0xff]  ;;  %v690_v26 = vld [vmem:[%s1120_s4 + $0x150] sm:$0xff] }
  0x14   : > { %338 = vmatpush.msra.mxu0 %v329_v11  ;;  %475 = vmatpush.msra.mxu3 %v708_v16  ;;  %v672_v27 = vld [vmem:[%s1120_s4 + $0xc0] sm:$0xff]  ;;  %v705_v28 = vld [vmem:[%s1120_s4 + $0x1c8] sm:$0xff]  ;;  %v325_v29 = vld [vmem:[%s1120_s4 + $0x38] sm:$0xff] }
  0x15   : > { %384 = vmatpush.msra.mxu1 %v675_v14  ;;  %429 = vmatpush.msra.mxu2 %v692_v18  ;;  %v689_v30 = vld [vmem:[%s1120_s4 + $0x148] sm:$0xff]  ;;  %v671_v31 = vld [vmem:[%s1120_s4 + $0xb8] sm:$0xff]  ;;  %v704_v32 = vld [vmem:[%s1120_s4 + $0x1c0] sm:$0xff] }
  0x16   : > { %339 = vmatpush.msra.mxu0 %v328_v17  ;;  %476 = vmatpush.msra.mxu3 %v707_v20  ;;  %v324_v33 = vld [vmem:[%s1120_s4 + $0x30] sm:$0xff]  ;;  %v688_v34 = vld [vmem:[%s1120_s4 + $0x140] sm:$0xff]  ;;  %v703_v37 = vld [vmem:[%s1120_s4 + $0x1b8] sm:$0xff] }
  0x17   : > { %385 = vmatpush.msra.mxu1 %v674_v19  ;;  %430 = vmatpush.msra.mxu2 %v691_v22  ;;  %v281_v35 = vld [vmem:[%s1117_s1] sm:$0x1]  ;;  %v670_v36 = vld [vmem:[%s1120_s4 + $0xb0] sm:$0xff]  ;;  %v283_v39 = vld [vmem:[%s1117_s1 + $0x1] sm:$0x1] }
  0x18   : > { %340 = vmatpush.msra.mxu0 %v327_v21  ;;  %477 = vmatpush.msra.mxu3 %v706_v24  ;;  %v934_v38 = vmul.f32 0.03125, %v281_v35  ;;  %v323_v40 = vld [vmem:[%s1120_s4 + $0x28] sm:$0xff]  ;;  %v687_v41 = vld [vmem:[%s1120_s4 + $0x138] sm:$0xff]  ;;  %v284_v42 = vmul.f32 0.03125, %v283_v39  ;;  %v702_v45 = vld [vmem:[%s1120_s4 + $0x1b0] sm:$0xff] }
  0x19   : > { %386 = vmatpush.msra.mxu1 %v673_v23  ;;  %431 = vmatpush.msra.mxu2 %v690_v26  ;;  %v669_v43 = vld [vmem:[%s1120_s4 + $0xa8] sm:$0xff]  ;;  %v322_v46 = vld [vmem:[%s1120_s4 + $0x20] sm:$0xff]  ;;  %v321_v50 = vld [vmem:[%s1120_s4 + $0x18] sm:$0xff] }
  0x1a   : > { %341 = vmatpush.msra.mxu0 %v326_v25  ;;  %478 = vmatpush.msra.mxu3 %v705_v28  ;;  %v285_v44 = vmul.f32 %v934_v38, %v934_v38  ;;  %v668_v47 = vld [vmem:[%s1120_s4 + $0xa0] sm:$0xff]  ;;  %v701_v49 = vld [vmem:[%s1120_s4 + $0x1a8] sm:$0xff]  ;;  %v667_v51 = vld [vmem:[%s1120_s4 + $0x98] sm:$0xff] }
  0x1b   : > { %387 = vmatpush.msra.mxu1 %v672_v27  ;;  %432 = vmatpush.msra.mxu2 %v689_v30  ;;  %v320_v53 = vld [vmem:[%s1120_s4 + $0x10] sm:$0xff]  ;;  %v700_v54 = vld [vmem:[%s1120_s4 + $0x1a0] sm:$0xff]  ;;  %v685_v58 = vld [vmem:[%s1120_s4 + $0x128] sm:$0xff] }
  0x1c   : > { %342 = vmatpush.msra.mxu0 %v325_v29  ;;  %479 = vmatpush.msra.mxu3 %v704_v32  ;;  %v286_v48 = vsub.f32 %v284_v42, %v285_v44  ;;  %v666_v56 = vld [vmem:[%s1120_s4 + $0x90] sm:$0xff]  ;;  %v319_v59 = vld [vmem:[%s1120_s4 + $0x8] sm:$0xff]  ;;  %v699_v60 = vld [vmem:[%s1120_s4 + $0x198] sm:$0xff] }
  0x1d   : > { %388 = vmatpush.msra.mxu1 %v671_v31  ;;  %433 = vmatpush.msra.mxu2 %v688_v34  ;;  %v686_v57 = vld [vmem:[%s1120_s4 + $0x130] sm:$0xff]  ;;  %v665_v61 = vld [vmem:[%s1120_s4 + $0x88] sm:$0xff]  ;;  %v684_v62 = vld [vmem:[%s1120_s4 + $0x120] sm:$0xff] }
  0x1e   : > { %343 = vmatpush.msra.mxu0 %v324_v33  ;;  %480 = vmatpush.msra.mxu3 %v703_v37  ;;  %v287_v52 = vmax.f32 %v286_v48, 0.0  ;;  %v318_v63 = vld [vmem:[%s1120_s4] sm:$0xff]  ;;  %v698_v0 = vld [vmem:[%s1120_s4 + $0x190] sm:$0xff]  ;;  %v727_v2 = vld [vmem:[%s1120_s4 + $0x278] sm:$0xff] }
  0x1f   : > { %389 = vmatpush.msra.mxu1 %v670_v36  ;;  %434 = vmatpush.msra.mxu2 %v687_v41  ;;  %v664_v1 = vld [vmem:[%s1120_s4 + $0x80] sm:$0xff]  ;;  %v683_v3 = vld [vmem:[%s1120_s4 + $0x118] sm:$0xff]  ;;  %v726_v4 = vld [vmem:[%s1120_s4 + $0x270] sm:$0xff] }
  0x20   : > { %344 = vmatpush.msra.mxu0 %v323_v40  ;;  %481 = vmatpush.msra.mxu3 %v702_v45  ;;  %v288_v55 = vadd.f32 1e-05, %v287_v52  ;;  %v697_v5 = vld [vmem:[%s1120_s4 + $0x188] sm:$0xff]  ;;  %v682_v7 = vld [vmem:[%s1120_s4 + $0x110] sm:$0xff]  ;;  %v696_v9 = vld [vmem:[%s1120_s4 + $0x180] sm:$0xff] }
  0x21   : > { %390 = vmatpush.msra.mxu1 %v669_v43  ;;  %435 = vmatpush.msra.mxu2 %v686_v57  ;;  %v725_v8 = vld [vmem:[%s1120_s4 + $0x268] sm:$0xff]  ;;  %v724_v12 = vld [vmem:[%s1120_s4 + $0x260] sm:$0xff]  ;;  %v723_v15 = vld [vmem:[%s1120_s4 + $0x258] sm:$0xff] }
  0x22   : > { %345 = vmatpush.msra.mxu0 %v322_v46  ;;  %482 = vmatpush.msra.mxu3 %v701_v49  ;;  %759 = vrsqrt.f32 %v288_v55  ;;  %v681_v11 = vld [vmem:[%s1120_s4 + $0x108] sm:$0xff]  ;;  %v680_v14 = vld [vmem:[%s1120_s4 + $0x100] sm:$0xff]  ;;  %vm295_vm0 = vweird.f32 %v288_v55  ;;  %v722_v17 = vld [vmem:[%s1120_s4 + $0x250] sm:$0xff] }
  0x23   : > { %391 = vmatpush.msra.mxu1 %v668_v47  ;;  %436 = vmatpush.msra.mxu2 %v685_v58  ;;  %v721_v19 = vld [vmem:[%s1120_s4 + $0x248] sm:$0xff]  ;;  %v758_v20 = vld [vmem:[%s1121_s5] ss:$0 sm:$0xff]  ;;  %v719_v26 = vld [vmem:[%s1120_s4 + $0x238] sm:$0xff] }
  0x24   : > { %346 = vmatpush.msra.mxu0 %v321_v50  ;;  %483 = vmatpush.msra.mxu3 %v700_v54  ;;  %v279_v21 = vld [vmem:[%s1118_s2] sm:$0x1]  ;;  %316 = vst [vmem:[#allocation2] sm:$0xff] %v758_v20  ;;  %v718_v31 = vld [vmem:[%s1120_s4 + $0x230] sm:$0xff]  ;;  %v717_v34 = vld [vmem:[%s1120_s4 + $0x228] sm:$0xff] }
  0x25   : > { %392 = vmatpush.msra.mxu1 %v667_v51  ;;  %437 = vmatpush.msra.mxu2 %v684_v62  ;;  %v720_v23 = vld [vmem:[%s1120_s4 + $0x240] sm:$0xff]  ;;  %317 = vst [vmem:[#allocation2 + $0x8] sm:$0xff] %v758_v20  ;;  %v278_v35 = vld [vmem:[%s271_s10 + $0x8] sm:$0xff]  ;;  %v715_v40 = vld [vmem:[%s1120_s4 + $0x218] sm:$0xff] }
  0x26   : > { %347 = vmatpush.msra.mxu0 %v320_v53  ;;  %484 = vmatpush.msra.mxu3 %v699_v60  ;;  %v277_v27 = vld [vmem:[%s271_s10] sm:$0xff]  ;;  %v714_v42 = vld [vmem:[%s1120_s4 + $0x210] sm:$0xff]  ;;  %v713_v44 = vld [vmem:[%s1120_s4 + $0x208] sm:$0xff] }
  0x27   : > { %393 = vmatpush.msra.mxu1 %v666_v56  ;;  %438 = vmatpush.msra.mxu2 %v683_v3  ;;  %v280_v28 = vld [vmem:[%s1119_s3] sm:$0x1] }
  0x28   : > { %348 = vmatpush.msra.mxu0 %v319_v59  ;;  %485 = vmatpush.msra.mxu3 %v698_v0  ;;  %v760_v6 = vpop.eup %759  ;;  %v716_v37 = vld [vmem:[%s1120_s4 + $0x220] sm:$0xff] }
  0x29   : > { %394 = vmatpush.msra.mxu1 %v665_v61  ;;  %v290_v10 = vmul.f32 %v760_v6, %v288_v55  ;;  %439 = vmatpush.msra.mxu2 %v682_v7  ;;  %vm296_vm1 = vweird.f32 %v760_v6  ;;  %v712_v45 = vld [vmem:[%s1120_s4 + $0x200] sm:$0xff] }
  0x2a   : > { %349 = vmatpush.msra.mxu0 %v318_v63  ;;  %486 = vmatpush.msra.mxu3 %v697_v5  ;;  %vm297_vm2 = vmor %vm295_vm0, %vm296_vm1 }
  0x2b   : > { %395 = vmatpush.msra.mxu1 %v664_v1  ;;  %v291_v13 = vmul.f32 %v760_v6, %v290_v10  ;;  %440 = vmatpush.msra.mxu2 %v681_v11 }
  0x2c   : > { %526 = vmatpush.msrb.mxu0 %v727_v2  ;;  %487 = vmatpush.msra.mxu3 %v696_v9  ;;  %v357_v47 = vld [vmem:[#allocation2 + $0x2] sm:$0xff]  ;;  %v358_v51 = vld [vmem:[#allocation2 + $0xa] sm:$0x3f] }
  0x2d   : > { %733 = vmatpush.msrb.mxu1 %v727_v2  ;;  %v292_v16 = vmul.f32 0.5, %v291_v13  ;;  %441 = vmatpush.msra.mxu2 %v680_v14 }
  0x2e   : > { %527 = vmatpush.msrb.mxu0 %v726_v4 }
  0x2f   : > { %734 = vmatpush.msrb.mxu1 %v726_v4  ;;  %v293_v18 = vsub.f32 1.5, %v292_v16 }
  0x30   : > { %528 = vmatpush.msrb.mxu0 %v725_v8 }
  0x31   : > { %735 = vmatpush.msrb.mxu1 %v725_v8  ;;  %v294_v22 = vmul.f32 %v760_v6, %v293_v18 }
  0x32   : > { %529 = vmatpush.msrb.mxu0 %v724_v12 }
  0x33   : > { %736 = vmatpush.msrb.mxu1 %v724_v12  ;;  %v298_v24 = vsel %vm297_vm2, %v760_v6, %v294_v22 }
  0x34   : > { %530 = vmatpush.msrb.mxu0 %v723_v15  ;;  %v299_v25 = vmul.f32 %v298_v24, %v279_v21 }
  0x35   : > { %737 = vmatpush.msrb.mxu1 %v723_v15 }
  0x36   : > { %531 = vmatpush.msrb.mxu0 %v722_v17  ;;  %v300_v29 = vmul.f32 %v299_v25, %v934_v38  ;;  %v302_v30 = vperm.slane %v299_v25, 0 }
  0x37   : > { %738 = vmatpush.msrb.mxu1 %v722_v17 }
  0x38   : > { %532 = vmatpush.msrb.mxu0 %v721_v19  ;;  %v301_v32 = vsub.f32 %v280_v28, %v300_v29  ;;  %v303_v33 = vmul.f32 %v302_v30, %v277_v27  ;;  %v304_v39 = vmul.f32 %v302_v30, %v278_v35 }
  0x39   : > { %739 = vmatpush.msrb.mxu1 %v721_v19 }
  0x3a   : > { %533 = vmatpush.msrb.mxu0 %v720_v23  ;;  %v306_v36 = vperm.slane %v301_v32, 0 }
  0x3b   : > { %740 = vmatpush.msrb.mxu1 %v720_v23 }
  0x3c   : > { %534 = vmatpush.msrb.mxu0 %v719_v26  ;;  %v308_v38 = vadd.f32 %v306_v36, %v303_v33  ;;  %v309_v43 = vadd.f32 %v306_v36, %v304_v39 }
  0x3d   : > { %741 = vmatpush.msrb.mxu1 %v719_v26 }
  0x3e   : > { %535 = vmatpush.msrb.mxu0 %v718_v31  ;;  %v310_v41 = vmax.f32 %v308_v38, 0.0  ;;  %v311_v46 = vmax.f32 %v309_v43, 0.0 }
  0x3f   : > { %742 = vmatpush.msrb.mxu1 %v718_v31 }
  0x40   : > { %536 = vmatpush.msrb.mxu0 %v717_v34  ;;  %396 = vmatmul.f32.vlgmr.msra.gmra.mxu1 %v310_v41 }
  0x41   : > { %743 = vmatpush.msrb.mxu1 %v717_v34  ;;  %350 = vmatmul.f32.vlgmr.msra.gmra.mxu0 %v310_v41 }
  0x42   : > { %537 = vmatpush.msrb.mxu0 %v716_v37  ;;  %488 = vmatmul.f32.vlgmr.msra.gmra.mxu3 %v310_v41 }
  0x43   : > { %744 = vmatpush.msrb.mxu1 %v716_v37  ;;  %442 = vmatmul.f32.vlgmr.msra.gmra.mxu2 %v310_v41 }
  0x44   : > { %538 = vmatpush.msrb.mxu0 %v715_v40 }
  0x45   : > { %745 = vmatpush.msrb.mxu1 %v715_v40 }
  0x46   : > { %539 = vmatpush.msrb.mxu0 %v714_v42 }
  0x47   : > { %746 = vmatpush.msrb.mxu1 %v714_v42 }
  0x48   : > { %540 = vmatpush.msrb.mxu0 %v713_v44  ;;  %399 = vmatmul.f32.gmra.mxu1 %v311_v46 }
  0x49   : > { %747 = vmatpush.msrb.mxu1 %v713_v44  ;;  %353 = vmatmul.f32.gmra.mxu0 %v311_v46 }
  0x4a   : > { %541 = vmatpush.msrb.mxu0 %v712_v45  ;;  %491 = vmatmul.f32.gmra.mxu3 %v311_v46 }
  0x4b   : > { %445 = vmatmul.f32.gmra.mxu2 %v311_v46  ;;  %748 = vmatpush.msrb.mxu1 %v712_v45 }
  0x50   : > { %545 = vmatmul.f32.vlgmr.msrb.gmra.mxu1 %v311_v46 }
  0x51   : > { %542 = vmatmul.f32.vlgmr.msrb.gmra.mxu0 %v310_v41 }
  0xbd   : > { %v397_v49 = vpop.f32.mrf.mxu1 }
  0xbe   : > { %v351_v48 = vpop.f32.mrf.mxu0 }
  0xbf   : > { %v359_v50 = vadd.f32 %v357_v47, %v351_v48 }
  0xc1   : > { %361 = vst [vmem:[#allocation2 + $0x2] sm:$0xff] %v359_v50 }
  0xc5   : > { %v489_v52 = vpop.f32.mrf.mxu3  ;;  %v400_v54 = vpop.f32.mrf.mxu1 }
  0xc6   : > { %v354_v53 = vpop.f32.mrf.mxu0  ;;  %v443_v58 = vpop.f32.mrf.mxu2  ;;  %v500_v60 = vrot.slane %v489_v52, 1 }
  0xc7   : > { %v360_v55 = vadd.f32 %v358_v51, %v354_v53 }
  0xc8   : > { %v403_v56 = vld [vmem:[#allocation2 + $0x1] sm:$0xff] }
  0xc9   : > { %362 = vst [vmem:[#allocation2 + $0xa] sm:$0x3f] %v360_v55  ;;  %v405_v57 = vadd.f32 %v403_v56, %v397_v49 }
  0xcb   : > { %407 = vst [vmem:[#allocation2 + $0x1] sm:$0xff] %v405_v57 }
  0xcd   : > { %v492_v59 = vpop.f32.mrf.mxu3  ;;  %v546_v63 = vpop.f32.mrf.mxu1 }
  0xce   : > { %v501_v61 = vrot.slane %v492_v59, 1  ;;  %v543_v62 = vpop.f32.mrf.mxu0  ;;  %v555_v2 = vrot.slane %v546_v63, 2  ;;  %v446_v10 = vpop.f32.mrf.mxu2 }
  0xcf   : > { %v554_v1 = vrot.slane %v543_v62, 2 }
  0xd0   : > { %v404_v0 = vld [vmem:[#allocation2 + $0x9] sm:$0x7f]  ;;  %v502_v5 = vsel %vm499_vm3, %v500_v60, %v501_v61 }
  0xd1   : > { %v406_v3 = vadd.f32 %v404_v0, %v400_v54  ;;  %v556_v7 = vsel %vm553_vm4, %v554_v1, %v555_v2 }
  0xd2   : > { %v449_v4 = vld [vmem:[#allocation2] sm:$0xff] }
  0xd3   : > { %408 = vst [vmem:[#allocation2 + $0x9] sm:$0x7f] %v406_v3  ;;  %v451_v6 = vadd.f32 %v449_v4, %v443_v58 }
  0xd5   : > { %v505_v8 = vadd.f32 %v502_v5, %v451_v6 }
  0xd7   : > { %v559_v9 = vadd.f32 %v556_v7, %v505_v8 }
  0xd9   : > { %561 = vst [vmem:[#allocation2] sm:$0xff] %v559_v9 }
  0xda   : > { %v450_v11 = vld [vmem:[#allocation2 + $0x8] sm:$0xff]  ;;  %565 = vst [vmem:[%s276_s14] sm:$0xff] %v559_v9 }
  0xdb   : > { %v452_v12 = vadd.f32 %v450_v11, %v446_v10 }
  0xdd   : > { %454 = vst [vmem:[#allocation2 + $0x8] sm:$0xff] %v452_v12 }
  0xe4   : > { %v496_v13 = vld [vmem:[#allocation2 + $0x8] sm:$0x7f] }
  0xe5   : > { %v506_v14 = vadd.f32 %v501_v61, %v496_v13 }
  0xe7   : > { %508 = vst [vmem:[#allocation2 + $0x8] sm:$0x7f] %v506_v14 }
  0xee   : > { %v550_v15 = vld [vmem:[#allocation2 + $0x8] sm:$0x3f] }
  0xef   : > { %v560_v16 = vadd.f32 %v555_v2, %v550_v15 }
  0xf1   : > { %562 = vst [vmem:[#allocation2 + $0x8] sm:$0x3f] %v560_v16 }
  0xf5   : > { %570 = sbr.rel (%p728_p4) target bundleno = 252 (0xfc), region = 48 }
  0xf8   : > { %v564_v17 = vld [vmem:[#allocation2 + $0x8] sm:$0xff] }
  0xf9   : > { %566 = vst [vmem:[%s276_s14 + $0x8] sm:$0xff] %v564_v17 }
  0xfa   : > { %v769_v18 = vmov 0.0  }
  0xfb   : > { %571 = vst [vmem:[%s1123_s7] sm:$0x3] %v769_v18 }
  0xfc PF: > { %v573_v19 = vadd.f32 %v564_v17, %v559_v9  ;;  %v583_v20 = vmul.f32 %v559_v9, %v559_v9  ;;  %v584_v21 = vmul.f32 %v564_v17, %v564_v17 }
  0xfe   : > { %v574_v22 = vrot.slane %v573_v19, 4  ;;  %v585_v23 = vadd.f32 %v584_v21, %v583_v20 }
 0x100   : > { %v575_v24 = vadd.f32 %v574_v22, %v573_v19  ;;  %v586_v25 = vrot.slane %v585_v23, 4 }
 0x102   : > { %v576_v26 = vrot.slane %v575_v24, 2  ;;  %v587_v27 = vadd.f32 %v586_v25, %v585_v23  ;;  %v572_v32 = vld [vmem:[%s1123_s7] sm:$0x1]  ;;  %v582_v35 = vld [vmem:[%s1123_s7 + $0x1] sm:$0x1] }
 0x104   : > { %v577_v28 = vadd.f32 %v576_v26, %v575_v24  ;;  %v588_v29 = vrot.slane %v587_v27, 2 }
 0x106   : > { %v578_v30 = vrot.slane %v577_v28, 1  ;;  %v589_v31 = vadd.f32 %v588_v29, %v587_v27 }
 0x108   : > { %v579_v33 = vadd.f32 %v578_v30, %v577_v28  ;;  %v590_v34 = vrot.slane %v589_v31, 1 }
 0x10a   : > { %v580_v36 = vadd.f32 %v579_v33, %v572_v32  ;;  %v591_v37 = vadd.f32 %v590_v34, %v589_v31 }
 0x10c   : > { %581 = vst [vmem:[%s1123_s7] sm:$0x1] %v580_v36  ;;  %v592_v38 = vadd.f32 %v591_v37, %v582_v35 }
 0x10e   : > { %593 = vst [vmem:[%s1123_s7 + $0x1] sm:$0x1] %v592_v38 }
 0x10f PF: > { %s18_s24 = sadd.s32 1, %s767_s24  }
 0x110   : > { %p15_p5 = scmp.ge.s32.totalorder %s18_s24, 4  }
 0x112   :  { %17 = sbr.rel (!%p15_p5) target bundleno = 1 (0x1), region = 90 }

// kernel: residual_block_pallas.6
= control target key start
LH: loop header
LB: loop body
LE: loop exit
PB: predicated region body
PF: predicated region fallthrough
CT: control target
= control target key end

     0   :  { %s678_s24 = smov 0   ;;  %s886_s0 = inlined_call_operand.vmem [shape: f32[2,16,128], index: 0, kind: input, shape index: {}]   ;;  %s887_s1 = inlined_call_operand.vmem [shape: f32[2,128], index: 1, kind: input, shape index: {}]   ;;  %s888_s2 = inlined_call_operand.vmem [shape: f32[1,128], index: 2, kind: input, shape index: {}]   ;;  %s889_s3 = inlined_call_operand.vmem [shape: f32[1,128], index: 3, kind: input, shape index: {}]   ;;  %s890_s4 = inlined_call_operand.vmem [shape: f32[3,128,128], index: 4, kind: input, shape index: {}]   ;;  %s891_s5 = inlined_call_operand.vmem [shape: f32[1,128], index: 5, kind: input, shape index: {}]   ;;  %s892_s6 = inlined_call_operand.vmem [shape: f32[2,16,128], index: 6, kind: output, shape index: {0}]   ;;  %s893_s7 = inlined_call_operand.vmem [shape: f32[2,128], index: 7, kind: output, shape index: {1}]  }
   0x1 LB: > { %s684_s25 = sadd.s32 4294967295, %s635_s24   ;;  %p559_p0 = scmp.ge.s32.totalorder %s635_s24, 1  ;;  %s635_s24 = sphi %s678_s24, %s18_s24  }
   0x2   : > { %p235_p1 = scmp.lt.s32.totalorder %s635_s24, 3 }
   0x4   : > { %p236_p2 = pnand %p559_p0, %p235_p1 }
   0x5   : > { %p267_p3 = scmp.lt.s32.totalorder (!%p236_p2), %s684_s25, 1  ;;  %p596_p4 = scmp.ne.s32.totalorder (!%p236_p2), %s684_s25, 0 }
   0x6   : > { %239 = sbr.rel (%p236_p2) target bundleno = 245 (0xf5), region = 44 }
   0xb   : > { %v333_v0 = vld [vmem:[%s890_s4 + $0x78] sm:$0xff]  ;;  %v332_v2 = vld [vmem:[%s890_s4 + $0x70] sm:$0xff]  ;;  %v331_v4 = vld [vmem:[%s890_s4 + $0x68] sm:$0xff]  ;;  %s847_s21 = scalar_select %p267_p3, %s684_s25, 1  ;;  %vm453_vm3 = vcmask 1046528  }
   0xc   : > { %v595_v1 = vld [vmem:[%s890_s4 + $0x178] sm:$0xff]  ;;  %334 = vmatpush.msra.mxu0 %v333_v0  ;;  %601 = vmatpush.msra.mxu3 %v333_v0  ;;  %v594_v3 = vld [vmem:[%s890_s4 + $0x170] sm:$0xff]  ;;  %v593_v5 = vld [vmem:[%s890_s4 + $0x168] sm:$0xff] }
   0xd   : > { %426 = vmatpush.msra.mxu2 %v595_v1  ;;  %v579_v6 = vld [vmem:[%s890_s4 + $0xf8] sm:$0xff]  ;;  %v330_v7 = vld [vmem:[%s890_s4 + $0x60] sm:$0xff]  ;;  %v578_v8 = vld [vmem:[%s890_s4 + $0xf0] sm:$0xff]  ;;  %s599_s22 = sshll.u32 %s847_s21, 4 }
   0xe   : > { %335 = vmatpush.msra.mxu0 %v332_v2  ;;  %602 = vmatpush.msra.mxu3 %v332_v2  ;;  %v592_v9 = vld [vmem:[%s890_s4 + $0x160] sm:$0xff]  ;;  %v577_v10 = vld [vmem:[%s890_s4 + $0xe8] sm:$0xff]  ;;  %v329_v11 = vld [vmem:[%s890_s4 + $0x58] sm:$0xff]  ;;  %s271_s29 = scalar_lea.vmem %s886_s0, %s599_s22  ;;  %s276_s11 = scalar_lea.vmem %s892_s6, %s599_s22 }
   0xf   : > { %427 = vmatpush.msra.mxu2 %v594_v3  ;;  %380 = vmatpush.msra.mxu1 %v579_v6  ;;  %v591_v12 = vld [vmem:[%s890_s4 + $0x158] sm:$0xff]  ;;  %v576_v13 = vld [vmem:[%s890_s4 + $0xe0] sm:$0xff]  ;;  %v328_v14 = vld [vmem:[%s890_s4 + $0x50] sm:$0xff] }
  0x10   : > { %336 = vmatpush.msra.mxu0 %v331_v4  ;;  %603 = vmatpush.msra.mxu3 %v331_v4  ;;  %v590_v15 = vld [vmem:[%s890_s4 + $0x150] sm:$0xff]  ;;  %v575_v16 = vld [vmem:[%s890_s4 + $0xd8] sm:$0xff]  ;;  %v327_v17 = vld [vmem:[%s890_s4 + $0x48] sm:$0xff] }
  0x11   : > { %428 = vmatpush.msra.mxu2 %v593_v5  ;;  %381 = vmatpush.msra.mxu1 %v578_v8  ;;  %v589_v18 = vld [vmem:[%s890_s4 + $0x148] sm:$0xff]  ;;  %v574_v19 = vld [vmem:[%s890_s4 + $0xd0] sm:$0xff]  ;;  %v326_v20 = vld [vmem:[%s890_s4 + $0x40] sm:$0xff] }
  0x12   : > { %337 = vmatpush.msra.mxu0 %v330_v7  ;;  %604 = vmatpush.msra.mxu3 %v330_v7  ;;  %v588_v21 = vld [vmem:[%s890_s4 + $0x140] sm:$0xff]  ;;  %v573_v22 = vld [vmem:[%s890_s4 + $0xc8] sm:$0xff]  ;;  %v325_v23 = vld [vmem:[%s890_s4 + $0x38] sm:$0xff] }
  0x13   : > { %429 = vmatpush.msra.mxu2 %v592_v9  ;;  %382 = vmatpush.msra.mxu1 %v577_v10  ;;  %v587_v24 = vld [vmem:[%s890_s4 + $0x138] sm:$0xff]  ;;  %v572_v25 = vld [vmem:[%s890_s4 + $0xc0] sm:$0xff]  ;;  %v324_v28 = vld [vmem:[%s890_s4 + $0x30] sm:$0xff] }
  0x14   : > { %338 = vmatpush.msra.mxu0 %v329_v11  ;;  %605 = vmatpush.msra.mxu3 %v329_v11  ;;  %v281_v26 = vld [vmem:[%s887_s1] sm:$0x1]  ;;  %v283_v27 = vld [vmem:[%s887_s1 + $0x1] sm:$0x1]  ;;  %v586_v31 = vld [vmem:[%s890_s4 + $0x130] sm:$0xff] }
  0x15   : > { %430 = vmatpush.msra.mxu2 %v591_v12  ;;  %383 = vmatpush.msra.mxu1 %v576_v13  ;;  %v775_v29 = vmul.f32 0.03125, %v281_v26  ;;  %v284_v30 = vmul.f32 0.03125, %v283_v27  ;;  %v571_v32 = vld [vmem:[%s890_s4 + $0xb8] sm:$0xff]  ;;  %v323_v33 = vld [vmem:[%s890_s4 + $0x28] sm:$0xff]  ;;  %v570_v36 = vld [vmem:[%s890_s4 + $0xb0] sm:$0xff] }
  0x16   : > { %339 = vmatpush.msra.mxu0 %v328_v14  ;;  %606 = vmatpush.msra.mxu3 %v328_v14  ;;  %v585_v35 = vld [vmem:[%s890_s4 + $0x128] sm:$0xff]  ;;  %v322_v37 = vld [vmem:[%s890_s4 + $0x20] sm:$0xff]  ;;  %v321_v41 = vld [vmem:[%s890_s4 + $0x18] sm:$0xff] }
  0x17   : > { %431 = vmatpush.msra.mxu2 %v590_v15  ;;  %384 = vmatpush.msra.mxu1 %v575_v16  ;;  %v285_v34 = vmul.f32 %v775_v29, %v775_v29  ;;  %v584_v39 = vld [vmem:[%s890_s4 + $0x120] sm:$0xff]  ;;  %v569_v40 = vld [vmem:[%s890_s4 + $0xa8] sm:$0xff]  ;;  %v583_v43 = vld [vmem:[%s890_s4 + $0x118] sm:$0xff] }
  0x18   : > { %340 = vmatpush.msra.mxu0 %v327_v17  ;;  %607 = vmatpush.msra.mxu3 %v327_v17  ;;  %v568_v44 = vld [vmem:[%s890_s4 + $0xa0] sm:$0xff]  ;;  %v320_v45 = vld [vmem:[%s890_s4 + $0x10] sm:$0xff]  ;;  %v567_v48 = vld [vmem:[%s890_s4 + $0x98] sm:$0xff] }
  0x19   : > { %432 = vmatpush.msra.mxu2 %v589_v18  ;;  %385 = vmatpush.msra.mxu1 %v574_v19  ;;  %v286_v38 = vsub.f32 %v284_v30, %v285_v34  ;;  %v582_v47 = vld [vmem:[%s890_s4 + $0x110] sm:$0xff]  ;;  %v319_v49 = vld [vmem:[%s890_s4 + $0x8] sm:$0xff]  ;;  %v318_v52 = vld [vmem:[%s890_s4] sm:$0xff] }
  0x1a   : > { %341 = vmatpush.msra.mxu0 %v326_v20  ;;  %608 = vmatpush.msra.mxu3 %v326_v20  ;;  %v581_v50 = vld [vmem:[%s890_s4 + $0x108] sm:$0xff]  ;;  %v566_v51 = vld [vmem:[%s890_s4 + $0x90] sm:$0xff]  ;;  %v580_v53 = vld [vmem:[%s890_s4 + $0x100] sm:$0xff] }
  0x1b   : > { %433 = vmatpush.msra.mxu2 %v588_v21  ;;  %386 = vmatpush.msra.mxu1 %v573_v22  ;;  %v287_v42 = vmax.f32 %v286_v38, 0.0  ;;  %v565_v54 = vld [vmem:[%s890_s4 + $0x88] sm:$0xff]  ;;  %v564_v55 = vld [vmem:[%s890_s4 + $0x80] sm:$0xff] }
  0x1c   : > { %342 = vmatpush.msra.mxu0 %v325_v23  ;;  %609 = vmatpush.msra.mxu3 %v325_v23  ;;  %v626_v58 = vld [vmem:[%s891_s5] ss:$0 sm:$0xff]  ;;  %v278_v4 = vld [vmem:[%s271_s29 + $0x8] sm:$0xff] }
  0x1d   : > { %434 = vmatpush.msra.mxu2 %v587_v24  ;;  %387 = vmatpush.msra.mxu1 %v572_v25  ;;  %v288_v46 = vadd.f32 1e-05, %v287_v42  ;;  %316 = vst [vmem:[#allocation2] sm:$0xff] %v626_v58  ;;  %v279_v62 = vld [vmem:[%s888_s2] sm:$0x1] }
  0x1e   : > { %343 = vmatpush.msra.mxu0 %v324_v28  ;;  %610 = vmatpush.msra.mxu3 %v324_v28  ;;  %317 = vst [vmem:[#allocation2 + $0x8] sm:$0xff] %v626_v58  ;;  %v277_v2 = vld [vmem:[%s271_s29] sm:$0xff] }
  0x1f   : > { %435 = vmatpush.msra.mxu2 %v586_v31  ;;  %388 = vmatpush.msra.mxu1 %v571_v32  ;;  %627 = vrsqrt.f32 %v288_v46  ;;  %vm295_vm0 = vweird.f32 %v288_v46  ;;  %v280_v3 = vld [vmem:[%s889_s3] sm:$0x1] }
  0x20   : > { %344 = vmatpush.msra.mxu0 %v323_v33  ;;  %611 = vmatpush.msra.mxu3 %v323_v33 }
  0x21   : > { %436 = vmatpush.msra.mxu2 %v585_v35  ;;  %389 = vmatpush.msra.mxu1 %v570_v36 }
  0x22   : > { %345 = vmatpush.msra.mxu0 %v322_v37  ;;  %612 = vmatpush.msra.mxu3 %v322_v37 }
  0x23   : > { %437 = vmatpush.msra.mxu2 %v584_v39  ;;  %390 = vmatpush.msra.mxu1 %v569_v40 }
  0x24   : > { %346 = vmatpush.msra.mxu0 %v321_v41  ;;  %613 = vmatpush.msra.mxu3 %v321_v41 }
  0x25   : > { %438 = vmatpush.msra.mxu2 %v583_v43  ;;  %391 = vmatpush.msra.mxu1 %v568_v44  ;;  %v628_v56 = vpop.eup %627  ;;  %v357_v15 = vld [vmem:[#allocation2 + $0x1] sm:$0xff]  ;;  %v358_v18 = vld [vmem:[#allocation2 + $0x9] sm:$0x7f] }
  0x26   : > { %347 = vmatpush.msra.mxu0 %v320_v45  ;;  %614 = vmatpush.msra.mxu3 %v320_v45  ;;  %v290_v57 = vmul.f32 %v628_v56, %v288_v46  ;;  %vm296_vm1 = vweird.f32 %v628_v56 }
  0x27   : > { %439 = vmatpush.msra.mxu2 %v582_v47  ;;  %392 = vmatpush.msra.mxu1 %v567_v48  ;;  %vm297_vm2 = vmor %vm295_vm0, %vm296_vm1 }
  0x28   : > { %348 = vmatpush.msra.mxu0 %v319_v49  ;;  %615 = vmatpush.msra.mxu3 %v319_v49  ;;  %v291_v59 = vmul.f32 %v628_v56, %v290_v57 }
  0x29   : > { %440 = vmatpush.msra.mxu2 %v581_v50  ;;  %393 = vmatpush.msra.mxu1 %v566_v51 }
  0x2a   : > { %349 = vmatpush.msra.mxu0 %v318_v52  ;;  %616 = vmatpush.msra.mxu3 %v318_v52  ;;  %v292_v60 = vmul.f32 0.5, %v291_v59 }
  0x2b   : > { %441 = vmatpush.msra.mxu2 %v580_v53  ;;  %394 = vmatpush.msra.mxu1 %v565_v54 }
  0x2c   : > { %v293_v61 = vsub.f32 1.5, %v292_v60 }
  0x2d   : > { %395 = vmatpush.msra.mxu1 %v564_v55 }
  0x2e   : > { %v294_v63 = vmul.f32 %v628_v56, %v293_v61 }
  0x30   : > { %v298_v0 = vsel %vm297_vm2, %v628_v56, %v294_v63 }
  0x31   : > { %v299_v1 = vmul.f32 %v298_v0, %v279_v62 }
  0x33   : > { %v300_v5 = vmul.f32 %v299_v1, %v775_v29  ;;  %v302_v6 = vperm.slane %v299_v1, 0 }
  0x35   : > { %v301_v7 = vsub.f32 %v280_v3, %v300_v5  ;;  %v303_v8 = vmul.f32 %v302_v6, %v277_v2  ;;  %v304_v9 = vmul.f32 %v302_v6, %v278_v4 }
  0x37   : > { %v306_v10 = vperm.slane %v301_v7, 0 }
  0x39   : > { %v308_v11 = vadd.f32 %v306_v10, %v303_v8  ;;  %v309_v12 = vadd.f32 %v306_v10, %v304_v9 }
  0x3b   : > { %v310_v13 = vmax.f32 %v308_v11, 0.0  ;;  %v311_v14 = vmax.f32 %v309_v12, 0.0 }
  0x3d   : > { %350 = vmatmul.f32.vlgmr.msra.gmra.mxu0 %v310_v13  ;;  %353 = vmatmul.f32.vlgmr.msra.gmra.mxu3 %v311_v14 }
  0x3e   : > { %442 = vmatmul.f32.vlgmr.msra.gmra.mxu2 %v310_v13  ;;  %396 = vmatmul.f32.vlgmr.msra.gmra.mxu1 %v310_v13 }
  0x46   : > { %445 = vmatmul.f32.gmra.mxu2 %v311_v14  ;;  %399 = vmatmul.f32.gmra.mxu1 %v311_v14 }
  0xba   : > { %v351_v16 = vpop.f32.mrf.mxu0 }
  0xbb   : > { %v359_v17 = vadd.f32 %v357_v15, %v351_v16  ;;  %v397_v19 = vpop.f32.mrf.mxu1 }
  0xbd   : > { %361 = vst [vmem:[#allocation2 + $0x1] sm:$0xff] %v359_v17 }
  0xc0   : > { %v354_v20 = vpop.f32.mrf.mxu3 }
  0xc1   : > { %v360_v21 = vadd.f32 %v358_v18, %v354_v20  ;;  %v443_v22 = vpop.f32.mrf.mxu2 }
  0xc2   : > { %v454_v23 = vrot.slane %v443_v22, 1 }
  0xc3   : > { %362 = vst [vmem:[#allocation2 + $0x9] sm:$0x7f] %v360_v21  ;;  %v400_v25 = vpop.f32.mrf.mxu1 }
  0xc4   : > { %v403_v24 = vld [vmem:[#allocation2] sm:$0xff] }
  0xc5   : > { %v405_v29 = vadd.f32 %v403_v24, %v397_v19 }
  0xc9   : > { %v446_v26 = vpop.f32.mrf.mxu2 }
  0xca   : > { %v455_v27 = vrot.slane %v446_v26, 1  ;;  %v404_v28 = vld [vmem:[#allocation2 + $0x8] sm:$0xff] }
  0xcb   : > { %v406_v30 = vadd.f32 %v404_v28, %v400_v25 }
  0xcc   : > { %v456_v31 = vsel %vm453_vm3, %v454_v23, %v455_v27 }
  0xcd   : > { %v459_v32 = vadd.f32 %v456_v31, %v405_v29  ;;  %408 = vst [vmem:[#allocation2 + $0x8] sm:$0xff] %v406_v30 }
  0xcf   : > { %461 = vst [vmem:[#allocation2] sm:$0xff] %v459_v32 }
  0xd0   : > { %465 = vst [vmem:[%s276_s11] sm:$0xff] %v459_v32 }
  0xd4   : > { %v450_v33 = vld [vmem:[#allocation2 + $0x8] sm:$0x7f] }
  0xd5   : > { %v460_v34 = vadd.f32 %v455_v27, %v450_v33 }
  0xd7   : > { %462 = vst [vmem:[#allocation2 + $0x8] sm:$0x7f] %v460_v34 }
  0xdb   : > { %470 = sbr.rel (%p596_p4) target bundleno = 226 (0xe2), region = 48 }
  0xde   : > { %v464_v35 = vld [vmem:[#allocation2 + $0x8] sm:$0xff] }
  0xdf   : > { %466 = vst [vmem:[%s276_s11 + $0x8] sm:$0xff] %v464_v35 }
  0xe0   : > { %v637_v36 = vmov 0.0  }
  0xe1   : > { %471 = vst [vmem:[%s893_s7] sm:$0x3] %v637_v36 }
  0xe2 PF: > { %v473_v37 = vadd.f32 %v464_v35, %v459_v32  ;;  %v483_v38 = vmul.f32 %v459_v32, %v459_v32  ;;  %v484_v39 = vmul.f32 %v464_v35, %v464_v35 }
  0xe4   : > { %v474_v40 = vrot.slane %v473_v37, 4  ;;  %v485_v41 = vadd.f32 %v484_v39, %v483_v38 }
  0xe6   : > { %v475_v42 = vadd.f32 %v474_v40, %v473_v37  ;;  %v486_v43 = vrot.slane %v485_v41, 4 }
  0xe8   : > { %v476_v44 = vrot.slane %v475_v42, 2  ;;  %v487_v45 = vadd.f32 %v486_v43, %v485_v41  ;;  %v472_v50 = vld [vmem:[%s893_s7] sm:$0x1]  ;;  %v482_v53 = vld [vmem:[%s893_s7 + $0x1] sm:$0x1] }
  0xea   : > { %v477_v46 = vadd.f32 %v476_v44, %v475_v42  ;;  %v488_v47 = vrot.slane %v487_v45, 2 }
  0xec   : > { %v478_v48 = vrot.slane %v477_v46, 1  ;;  %v489_v49 = vadd.f32 %v488_v47, %v487_v45 }
  0xee   : > { %v479_v51 = vadd.f32 %v478_v48, %v477_v46  ;;  %v490_v52 = vrot.slane %v489_v49, 1 }
  0xf0   : > { %v480_v54 = vadd.f32 %v479_v51, %v472_v50  ;;  %v491_v55 = vadd.f32 %v490_v52, %v489_v49 }
  0xf2   : > { %481 = vst [vmem:[%s893_s7] sm:$0x1] %v480_v54  ;;  %v492_v56 = vadd.f32 %v491_v55, %v482_v53 }
  0xf4   : > { %493 = vst [vmem:[%s893_s7 + $0x1] sm:$0x1] %v492_v56 }
  0xf5 PF: > { %s18_s24 = sadd.s32 1, %s635_s24  }
  0xf6   : > { %p15_p5 = scmp.ge.s32.totalorder %s18_s24, 4  }
  0xf8   :  { %17 = sbr.rel (!%p15_p5) target bundleno = 1 (0x1), region = 88 }

</bundles_post_ra>
